<compile_context>
chip_gen: v6e
topology: v6e:2x2x1
jax: 0.10.0
libtpu: 0.0.40
codegen_flags: <defaults>
</compile_context>

<pallas_src>
import functools
import numpy as np
import jax
import jax.numpy as jnp
from jax import lax
from jax.experimental import pallas as pl
from jax.experimental.pallas import tpu as pltpu

# Small, TPU-friendly instantiation of the module's constructor arguments.
NINP = 128     # ninp (embedding dim); head_dim = 128 / 4 = 32
NHEAD = 4      # nhead
NHID = 256     # nhid (FFN hidden dim)
NLAYERS = 2    # nlayers
LN_EPS = 1e-5  # nn.LayerNorm default eps

PARAM_ORDER = ("w_qkv", "b_qkv", "w_o", "b_o", "ln1_g", "ln1_b",
               "w_ff1", "b_ff1", "w_ff2", "b_ff2", "ln2_g", "ln2_b")


def transformer_encoder_kernel(x_ref,
                               wqkv_ref, bqkv_ref, wo_ref, bo_ref,
                               ln1g_ref, ln1b_ref,
                               wff1_ref, bff1_ref, wff2_ref, bff2_ref,
                               ln2g_ref, ln2b_ref,
                               out_ref, *, nhead):
    """One block of Bblk batch rows per grid step; all layers resident in VMEM."""
    Bblk, T, E = x_ref.shape
    L = wqkv_ref.shape[0]
    dh = E // nhead
    M = Bblk * T                                           # folded matmul M dim

    def layer_norm(h, g, b):
        mu = jnp.mean(h, axis=-1, keepdims=True)
        var = jnp.maximum(jnp.mean(h * h, axis=-1, keepdims=True) - mu * mu, 0.0)
        return (h - mu) * lax.rsqrt(var + LN_EPS) * g + b

    x = x_ref[...].astype(jnp.float32).reshape(M, E)       # [M, E] f32

    for l in range(L):                                     # static unroll (2 layers)
        # ---------------- self attention ----------------
        # fused QKV: one [M,E] @ [E,3E] bf16 matmul, f32 accumulate + f32 bias
        qkv = (jnp.dot(x.astype(jnp.bfloat16), wqkv_ref[l],
                       preferred_element_type=jnp.float32)
               + bqkv_ref[l])                              # [M, 3E]
        qkv3 = qkv.reshape(Bblk, T, 3 * E)                 # per-batch view
        wo_l = wo_ref[l]                                   # [E, E] bf16

        attn_out = jnp.zeros((M, E), jnp.float32)
        for h in range(nhead):                             # static unroll (4 heads)
            q3 = qkv3[:, :, h * dh:(h + 1) * dh]           # [Bblk, T, dh]
            k3 = qkv3[:, :, E + h * dh:E + (h + 1) * dh]
            v3 = qkv3[:, :, 2 * E + h * dh:2 * E + (h + 1) * dh]
            # scale already folded into the Q weights at init time
            s = jnp.einsum('bqd,bkd->bqk', q3, k3,
                           preferred_element_type=jnp.float32)   # [Bblk, T, T]
            s = s - jnp.max(s, axis=-1, keepdims=True)
            p = jnp.exp(s)
            a = p * pl.reciprocal(jnp.sum(p, axis=-1, keepdims=True), approx=True)
            ctx = jnp.einsum('bqk,bkd->bqd', a, v3,
                             preferred_element_type=jnp.float32)  # [Bblk, T, dh]
            # decomposed out-projection: accumulate per head, no lane concat
            attn_out = attn_out + jnp.dot(
                ctx.reshape(M, dh).astype(jnp.bfloat16),
                wo_l[h * dh:(h + 1) * dh, :],
                preferred_element_type=jnp.float32)
        attn_out = attn_out + bo_ref[l]
        # dropout is identity in eval mode
        x = layer_norm(x + attn_out, ln1g_ref[l], ln1b_ref[l])

        # ---------------- feed forward -------------------
        ff = jnp.maximum(
            jnp.dot(x.astype(jnp.bfloat16), wff1_ref[l],
                    preferred_element_type=jnp.float32) + bff1_ref[l], 0.0)
        ff = (jnp.dot(ff.astype(jnp.bfloat16), wff2_ref[l],
                      preferred_element_type=jnp.float32) + bff2_ref[l])
        x = layer_norm(x + ff, ln2g_ref[l], ln2b_ref[l])

    out_ref[...] = x.reshape(Bblk, T, E).astype(out_ref.dtype)   # lane-dense store


def _whole_array_spec(arr):
    """Whole array resident in VMEM, same block every grid step (DMA once)."""
    nd = arr.ndim
    return pl.BlockSpec(arr.shape, lambda b, _nd=nd: (0,) * _nd)


def _num_tensorcores():
    """2 TCs per chip on v7x, 1 on v5e/v6e (conservative fallback: 1)."""
    try:
        kind = jax.devices()[0].device_kind.lower()
    except Exception:
        return 1
    return 2 if "v7" in kind else 1


@jax.jit
def transformer_forward(x_emb, params):
    """x_emb [B, T, E] -> encoder output [T, B, E] (matches PyTorch forward)."""
    B, T, E = x_emb.shape
    n_grid = max(1, min(B, _num_tensorcores()))   # 1 step on v5e/v6e, 2 on v7x
    bblk = -(-B // n_grid)                        # ceil(B / n_grid)
    Bp = n_grid * bblk
    x_in = x_emb
    if Bp != B:
        x_in = jnp.pad(x_emb, ((0, Bp - B), (0, 0), (0, 0)))

    weights = [params[k] for k in PARAM_ORDER]

    # advisory cost estimate so XLA schedules neighbors around the custom call
    L = params["w_qkv"].shape[0]
    nhid = params["w_ff1"].shape[-1]
    dh = E // NHEAD
    flops = int(2 * Bp * T * L * (E * 3 * E + E * E + 2 * E * nhid)
                + 2 * Bp * L * NHEAD * 2 * T * T * dh)
    bytes_weights = sum(int(np.prod(w.shape)) * w.dtype.itemsize for w in weights)
    bytes_accessed = int(bytes_weights + 2 * Bp * T * E * x_emb.dtype.itemsize)
    cost = pl.CostEstimate(flops=flops,
                           transcendentals=int(Bp * L * NHEAD * T * T),
                           bytes_accessed=bytes_accessed)

    kernel = functools.partial(transformer_encoder_kernel, nhead=NHEAD)
    out_bte = pl.pallas_call(
        kernel,
        out_shape=jax.ShapeDtypeStruct((Bp, T, E), x_emb.dtype),
        grid=(n_grid,),
        in_specs=[pl.BlockSpec((bblk, T, E), lambda b: (b, 0, 0))]
                 + [_whole_array_spec(w) for w in weights],
        out_specs=pl.BlockSpec((bblk, T, E), lambda b: (b, 0, 0)),
        compiler_params=pltpu.CompilerParams(
            dimension_semantics=("parallel",)),
        cost_estimate=cost,
    )(x_in, *weights)

    # PyTorch forward returns seq-first [T, B, E]; cheap XLA transpose outside
    # the kernel keeps the kernel's output block lane-dense.
    return jnp.transpose(out_bte, (1, 0, 2))[:, :B, :]


def init_transformer_params(key, ninp=NINP, nhead=NHEAD, nhid=NHID, nlayers=NLAYERS):
    """Deterministic synthetic init mirroring the PyTorch layer structure.

    Weights are stored transposed relative to PyTorch ([in, out]) so the kernel
    computes x @ W; per-layer tensors are stacked along a leading L axis.
    Matmul weights are stored in bf16 (halves DMA bytes, hits MXU bf16 peak);
    the 1/sqrt(head_dim) attention scale is folded into the Q projection.
    """
    def u(k, shape, fan_in):
        bound = 1.0 / np.sqrt(fan_in)
        return jax.random.uniform(k, shape, jnp.float32, -bound, bound)

    dh = ninp // nhead
    q_scale = 1.0 / np.sqrt(dh)
    keys = jax.random.split(key, nlayers * 8)
    per = {name: [] for name in PARAM_ORDER}
    for l in range(nlayers):
        k = keys[l * 8:(l + 1) * 8]
        w_qkv = u(k[0], (ninp, 3 * ninp), ninp)
        b_qkv = u(k[1], (1, 3 * ninp), ninp)
        w_qkv = w_qkv.at[:, :ninp].multiply(q_scale)   # fold attention scale into Q
        b_qkv = b_qkv.at[:, :ninp].multiply(q_scale)
        per["w_qkv"].append(w_qkv.astype(jnp.bfloat16))
        per["b_qkv"].append(b_qkv)
        per["w_o"].append(u(k[2], (ninp, ninp), ninp).astype(jnp.bfloat16))
        per["b_o"].append(u(k[3], (1, ninp), ninp))
        per["ln1_g"].append(jnp.ones((1, ninp), jnp.float32))
        per["ln1_b"].append(jnp.zeros((1, ninp), jnp.float32))
        per["w_ff1"].append(u(k[4], (ninp, nhid), ninp).astype(jnp.bfloat16))
        per["b_ff1"].append(u(k[5], (1, nhid), ninp))
        per["w_ff2"].append(u(k[6], (nhid, ninp), nhid).astype(jnp.bfloat16))
        per["b_ff2"].append(u(k[7], (1, ninp), nhid))
        per["ln2_g"].append(jnp.ones((1, ninp), jnp.float32))
        per["ln2_b"].append(jnp.zeros((1, ninp), jnp.float32))
    return {name: jnp.stack(v, axis=0) for name, v in per.items()}


def transformer_reference(x_emb, params):
    """Pure-JAX (non-Pallas) reference of the same post-norm eval-mode encoder.

    Mirrors the kernel's numerics: bf16-rounded matmul operands, f32 accumulate,
    f32 elementwise math; exact softmax division (approx-reciprocal error in the
    kernel is ~1e-4 relative and covered by the test tolerance).
    """
    B, T, E = x_emb.shape
    dh = E // NHEAD
    L = params["w_qkv"].shape[0]
    hp = lax.Precision.HIGHEST

    def bfr(a):
        return a.astype(jnp.bfloat16).astype(jnp.float32)

    def mm(a, w):
        return jnp.matmul(bfr(a), w.astype(jnp.float32), precision=hp)

    def ln(h, g, b):
        mu = jnp.mean(h, -1, keepdims=True)
        var = jnp.mean(jnp.square(h - mu), -1, keepdims=True)
        return (h - mu) / jnp.sqrt(var + LN_EPS) * g + b

    h = x_emb.astype(jnp.float32)                      # [B, T, E]
    for l in range(L):
        p = {k: params[k][l] for k in PARAM_ORDER}
        qkv = mm(h, p["w_qkv"]) + p["b_qkv"]
        q, kk, v = qkv[..., :E], qkv[..., E:2 * E], qkv[..., 2 * E:]
        ctxs = []
        for hd in range(NHEAD):
            sl = slice(hd * dh, (hd + 1) * dh)
            s = jnp.einsum('btd,bsd->bts', q[..., sl], kk[..., sl], precision=hp)
            s = s - jnp.max(s, -1, keepdims=True)
            e = jnp.exp(s)
            a = e / jnp.sum(e, -1, keepdims=True)
            ctxs.append(jnp.einsum('bts,bsd->btd', a, v[..., sl], precision=hp))
        ctx = jnp.concatenate(ctxs, -1)
        h = ln(h + mm(ctx, p["w_o"]) + p["b_o"], p["ln1_g"], p["ln1_b"])
        ff = jnp.maximum(mm(h, p["w_ff1"]) + p["b_ff1"], 0.0)
        ff = mm(ff, p["w_ff2"]) + p["b_ff2"]
        h = ln(h + ff, p["ln2_g"], p["ln2_b"])
    return jnp.transpose(h, (1, 0, 2))                 # [T, B, E]


if __name__ == "__main__":
    B, T = 2, 8
    key = jax.random.PRNGKey(0)
    k_param, k_x = jax.random.split(key)

    params = init_transformer_params(k_param)
    x_emb = jax.random.normal(k_x, (B, T, NINP), jnp.float32)

    out = jax.block_until_ready(transformer_forward(x_emb, params))
    ref = jax.block_until_ready(transformer_reference(x_emb, params))

    assert out.shape == (T, B, NINP)
    out_np, ref_np = np.asarray(out), np.asarray(ref)
    err = float(np.max(np.abs(out_np - ref_np)))
    assert np.allclose(out_np, ref_np, atol=1e-2, rtol=1e-2), err

    print("KERNEL_OK")
</pallas_src>

<mosaic_0001>
module attributes {stable_mosaic.version = 11 : i64} {
  func.func @transformer_encoder_kernel(%arg0: i32, %arg1: memref<2x8x128xf32, #tpu.memory_space<vmem>>, %arg2: memref<2x128x384xbf16, #tpu.memory_space<vmem>>, %arg3: memref<2x1x384xf32, #tpu.memory_space<vmem>>, %arg4: memref<2x128x128xbf16, #tpu.memory_space<vmem>>, %arg5: memref<2x1x128xf32, #tpu.memory_space<vmem>>, %arg6: memref<2x1x128xf32, #tpu.memory_space<vmem>>, %arg7: memref<2x1x128xf32, #tpu.memory_space<vmem>>, %arg8: memref<2x128x256xbf16, #tpu.memory_space<vmem>>, %arg9: memref<2x1x256xf32, #tpu.memory_space<vmem>>, %arg10: memref<2x256x128xbf16, #tpu.memory_space<vmem>>, %arg11: memref<2x1x128xf32, #tpu.memory_space<vmem>>, %arg12: memref<2x1x128xf32, #tpu.memory_space<vmem>>, %arg13: memref<2x1x128xf32, #tpu.memory_space<vmem>>, %arg14: memref<2x8x128xf32, #tpu.memory_space<vmem>>) attributes {dimension_semantics = [#tpu.dimension_semantics<parallel>], iteration_bounds = array<i64: 1>, scalar_prefetch = 0 : i64, scratch_operands = 0 : i64, tpu.core_type = #tpu.core_type<tc>, window_params = [{transform_indices = @transform_0, window_bounds = array<i64: 2, 8, 128>}, {pipeline_mode = #tpu.pipeline_mode<synchronous>, transform_indices = @transform_1, window_bounds = array<i64: 2, 128, 384>}, {pipeline_mode = #tpu.pipeline_mode<synchronous>, transform_indices = @transform_2, window_bounds = array<i64: 2, 1, 384>}, {pipeline_mode = #tpu.pipeline_mode<synchronous>, transform_indices = @transform_3, window_bounds = array<i64: 2, 128, 128>}, {pipeline_mode = #tpu.pipeline_mode<synchronous>, transform_indices = @transform_4, window_bounds = array<i64: 2, 1, 128>}, {pipeline_mode = #tpu.pipeline_mode<synchronous>, transform_indices = @transform_5, window_bounds = array<i64: 2, 1, 128>}, {pipeline_mode = #tpu.pipeline_mode<synchronous>, transform_indices = @transform_6, window_bounds = array<i64: 2, 1, 128>}, {pipeline_mode = #tpu.pipeline_mode<synchronous>, transform_indices = @transform_7, window_bounds = array<i64: 2, 128, 256>}, {pipeline_mode = #tpu.pipeline_mode<synchronous>, transform_indices = @transform_8, window_bounds = array<i64: 2, 1, 256>}, {pipeline_mode = #tpu.pipeline_mode<synchronous>, transform_indices = @transform_9, window_bounds = array<i64: 2, 256, 128>}, {pipeline_mode = #tpu.pipeline_mode<synchronous>, transform_indices = @transform_10, window_bounds = array<i64: 2, 1, 128>}, {pipeline_mode = #tpu.pipeline_mode<synchronous>, transform_indices = @transform_11, window_bounds = array<i64: 2, 1, 128>}, {pipeline_mode = #tpu.pipeline_mode<synchronous>, transform_indices = @transform_12, window_bounds = array<i64: 2, 1, 128>}, {transform_indices = @transform_13, window_bounds = array<i64: 2, 8, 128>}]} {
    %c0 = arith.constant 0 : index
    %c0_0 = arith.constant 0 : index
    %c0_1 = arith.constant 0 : index
    %0 = vector.load %arg1[%c0, %c0_0, %c0_1] : memref<2x8x128xf32, #tpu.memory_space<vmem>>, vector<2x8x128xf32>
    %1 = vector.shape_cast %0 : vector<2x8x128xf32> to vector<16x128xf32>
    %2 = arith.truncf %1 : vector<16x128xf32> to vector<16x128xbf16>
    %c0_2 = arith.constant 0 : index
    %c0_3 = arith.constant 0 : index
    %c0_4 = arith.constant 0 : index
    %3 = vector.load %arg2[%c0_2, %c0_3, %c0_4] : memref<2x128x384xbf16, #tpu.memory_space<vmem>>, vector<1x128x384xbf16>
    %4 = vector.shape_cast %3 : vector<1x128x384xbf16> to vector<128x384xbf16>
    %cst = arith.constant dense<0.000000e+00> : vector<16x384xf32>
    %5 = tpu.matmul %2, %4, %cst {dimension_numbers = #tpu.dot_dimension_numbers<[1], [0], [0], [1], [0, 0, 1, 1], [], []>} : vector<16x128xbf16>, vector<128x384xbf16>, vector<16x384xf32> -> vector<16x384xf32>
    %c0_5 = arith.constant 0 : index
    %c0_6 = arith.constant 0 : index
    %c0_7 = arith.constant 0 : index
    %6 = vector.load %arg3[%c0_5, %c0_6, %c0_7] : memref<2x1x384xf32, #tpu.memory_space<vmem>>, vector<1x1x384xf32>
    %7 = vector.shape_cast %6 : vector<1x1x384xf32> to vector<1x384xf32>
    %8 = vector.broadcast %7 : vector<1x384xf32> to vector<16x384xf32>
    %9 = arith.addf %5, %8 : vector<16x384xf32>
    %10 = vector.shape_cast %9 : vector<16x384xf32> to vector<2x8x384xf32>
    %c0_8 = arith.constant 0 : index
    %c0_9 = arith.constant 0 : index
    %c0_10 = arith.constant 0 : index
    %11 = vector.load %arg4[%c0_8, %c0_9, %c0_10] : memref<2x128x128xbf16, #tpu.memory_space<vmem>>, vector<1x128x128xbf16>
    %12 = vector.shape_cast %11 : vector<1x128x128xbf16> to vector<128x128xbf16>
    %cst_11 = arith.constant 0.000000e+00 : f32
    %13 = vector.broadcast %cst_11 : f32 to vector<16x128xf32>
    %14 = vector.extract_strided_slice %10 {offsets = [0, 0, 0], sizes = [2, 8, 32], strides = [1, 1, 1]} : vector<2x8x384xf32> to vector<2x8x32xf32>
    %15 = vector.extract_strided_slice %10 {offsets = [0, 0, 128], sizes = [2, 8, 32], strides = [1, 1, 1]} : vector<2x8x384xf32> to vector<2x8x32xf32>
    %16 = vector.extract_strided_slice %10 {offsets = [0, 0, 256], sizes = [2, 8, 32], strides = [1, 1, 1]} : vector<2x8x384xf32> to vector<2x8x32xf32>
    "tpu.trace_start"() <{level = 10 : i32, message = "bqd,bkd->bqk"}> : () -> ()
    %cst_12 = arith.constant dense<0.000000e+00> : vector<2x8x8xf32>
    %17 = tpu.matmul %14, %15, %cst_12 {dimension_numbers = #tpu.dot_dimension_numbers<[2], [2], [1], [1], [0, 0, 0, 1, 1, 1], [0], [0]>} : vector<2x8x32xf32>, vector<2x8x32xf32>, vector<2x8x8xf32> -> vector<2x8x8xf32>
    "tpu.trace_stop"() : () -> ()
    %cst_13 = arith.constant dense<0xFF800000> : vector<2x8xf32>
    %18 = vector.multi_reduction <maximumf>, %17, %cst_13 [2] : vector<2x8x8xf32> to vector<2x8xf32>
    %19 = vector.shape_cast %18 : vector<2x8xf32> to vector<2x8x1xf32>
    %20 = vector.broadcast %19 : vector<2x8x1xf32> to vector<2x8x8xf32>
    %21 = arith.subf %17, %20 : vector<2x8x8xf32>
    %22 = math.exp %21 : vector<2x8x8xf32>
    %cst_14 = arith.constant dense<0.000000e+00> : vector<2x8xf32>
    %23 = vector.multi_reduction <add>, %22, %cst_14 [2] : vector<2x8x8xf32> to vector<2x8xf32>
    %24 = vector.shape_cast %23 : vector<2x8xf32> to vector<2x8x1xf32>
    %25 = tpu.reciprocal %24 {approx = true} : vector<2x8x1xf32> -> vector<2x8x1xf32>
    %26 = vector.broadcast %25 : vector<2x8x1xf32> to vector<2x8x8xf32>
    %27 = arith.mulf %22, %26 : vector<2x8x8xf32>
    "tpu.trace_start"() <{level = 10 : i32, message = "bqk,bkd->bqd"}> : () -> ()
    %cst_15 = arith.constant dense<0.000000e+00> : vector<2x8x32xf32>
    %28 = tpu.matmul %27, %16, %cst_15 {dimension_numbers = #tpu.dot_dimension_numbers<[2], [1], [1], [2], [0, 0, 0, 1, 1, 2], [0], [0]>} : vector<2x8x8xf32>, vector<2x8x32xf32>, vector<2x8x32xf32> -> vector<2x8x32xf32>
    "tpu.trace_stop"() : () -> ()
    %29 = vector.shape_cast %28 : vector<2x8x32xf32> to vector<16x32xf32>
    %30 = arith.truncf %29 : vector<16x32xf32> to vector<16x32xbf16>
    %31 = vector.extract_strided_slice %12 {offsets = [0, 0], sizes = [32, 128], strides = [1, 1]} : vector<128x128xbf16> to vector<32x128xbf16>
    %cst_16 = arith.constant dense<0.000000e+00> : vector<16x128xf32>
    %32 = tpu.matmul %30, %31, %cst_16 {dimension_numbers = #tpu.dot_dimension_numbers<[1], [0], [0], [1], [0, 0, 1, 1], [], []>} : vector<16x32xbf16>, vector<32x128xbf16>, vector<16x128xf32> -> vector<16x128xf32>
    %33 = arith.addf %13, %32 : vector<16x128xf32>
    %34 = vector.extract_strided_slice %10 {offsets = [0, 0, 32], sizes = [2, 8, 32], strides = [1, 1, 1]} : vector<2x8x384xf32> to vector<2x8x32xf32>
    %35 = vector.extract_strided_slice %10 {offsets = [0, 0, 160], sizes = [2, 8, 32], strides = [1, 1, 1]} : vector<2x8x384xf32> to vector<2x8x32xf32>
    %36 = vector.extract_strided_slice %10 {offsets = [0, 0, 288], sizes = [2, 8, 32], strides = [1, 1, 1]} : vector<2x8x384xf32> to vector<2x8x32xf32>
    "tpu.trace_start"() <{level = 10 : i32, message = "bqd,bkd->bqk"}> : () -> ()
    %cst_17 = arith.constant dense<0.000000e+00> : vector<2x8x8xf32>
    %37 = tpu.matmul %34, %35, %cst_17 {dimension_numbers = #tpu.dot_dimension_numbers<[2], [2], [1], [1], [0, 0, 0, 1, 1, 1], [0], [0]>} : vector<2x8x32xf32>, vector<2x8x32xf32>, vector<2x8x8xf32> -> vector<2x8x8xf32>
    "tpu.trace_stop"() : () -> ()
    %cst_18 = arith.constant dense<0xFF800000> : vector<2x8xf32>
    %38 = vector.multi_reduction <maximumf>, %37, %cst_18 [2] : vector<2x8x8xf32> to vector<2x8xf32>
    %39 = vector.shape_cast %38 : vector<2x8xf32> to vector<2x8x1xf32>
    %40 = vector.broadcast %39 : vector<2x8x1xf32> to vector<2x8x8xf32>
    %41 = arith.subf %37, %40 : vector<2x8x8xf32>
    %42 = math.exp %41 : vector<2x8x8xf32>
    %cst_19 = arith.constant dense<0.000000e+00> : vector<2x8xf32>
    %43 = vector.multi_reduction <add>, %42, %cst_19 [2] : vector<2x8x8xf32> to vector<2x8xf32>
    %44 = vector.shape_cast %43 : vector<2x8xf32> to vector<2x8x1xf32>
    %45 = tpu.reciprocal %44 {approx = true} : vector<2x8x1xf32> -> vector<2x8x1xf32>
    %46 = vector.broadcast %45 : vector<2x8x1xf32> to vector<2x8x8xf32>
    %47 = arith.mulf %42, %46 : vector<2x8x8xf32>
    "tpu.trace_start"() <{level = 10 : i32, message = "bqk,bkd->bqd"}> : () -> ()
    %cst_20 = arith.constant dense<0.000000e+00> : vector<2x8x32xf32>
    %48 = tpu.matmul %47, %36, %cst_20 {dimension_numbers = #tpu.dot_dimension_numbers<[2], [1], [1], [2], [0, 0, 0, 1, 1, 2], [0], [0]>} : vector<2x8x8xf32>, vector<2x8x32xf32>, vector<2x8x32xf32> -> vector<2x8x32xf32>
    "tpu.trace_stop"() : () -> ()
    %49 = vector.shape_cast %48 : vector<2x8x32xf32> to vector<16x32xf32>
    %50 = arith.truncf %49 : vector<16x32xf32> to vector<16x32xbf16>
    %51 = vector.extract_strided_slice %12 {offsets = [32, 0], sizes = [32, 128], strides = [1, 1]} : vector<128x128xbf16> to vector<32x128xbf16>
    %cst_21 = arith.constant dense<0.000000e+00> : vector<16x128xf32>
    %52 = tpu.matmul %50, %51, %cst_21 {dimension_numbers = #tpu.dot_dimension_numbers<[1], [0], [0], [1], [0, 0, 1, 1], [], []>} : vector<16x32xbf16>, vector<32x128xbf16>, vector<16x128xf32> -> vector<16x128xf32>
    %53 = arith.addf %33, %52 : vector<16x128xf32>
    %54 = vector.extract_strided_slice %10 {offsets = [0, 0, 64], sizes = [2, 8, 32], strides = [1, 1, 1]} : vector<2x8x384xf32> to vector<2x8x32xf32>
    %55 = vector.extract_strided_slice %10 {offsets = [0, 0, 192], sizes = [2, 8, 32], strides = [1, 1, 1]} : vector<2x8x384xf32> to vector<2x8x32xf32>
    %56 = vector.extract_strided_slice %10 {offsets = [0, 0, 320], sizes = [2, 8, 32], strides = [1, 1, 1]} : vector<2x8x384xf32> to vector<2x8x32xf32>
    "tpu.trace_start"() <{level = 10 : i32, message = "bqd,bkd->bqk"}> : () -> ()
    %cst_22 = arith.constant dense<0.000000e+00> : vector<2x8x8xf32>
    %57 = tpu.matmul %54, %55, %cst_22 {dimension_numbers = #tpu.dot_dimension_numbers<[2], [2], [1], [1], [0, 0, 0, 1, 1, 1], [0], [0]>} : vector<2x8x32xf32>, vector<2x8x32xf32>, vector<2x8x8xf32> -> vector<2x8x8xf32>
    "tpu.trace_stop"() : () -> ()
    %cst_23 = arith.constant dense<0xFF800000> : vector<2x8xf32>
    %58 = vector.multi_reduction <maximumf>, %57, %cst_23 [2] : vector<2x8x8xf32> to vector<2x8xf32>
    %59 = vector.shape_cast %58 : vector<2x8xf32> to vector<2x8x1xf32>
    %60 = vector.broadcast %59 : vector<2x8x1xf32> to vector<2x8x8xf32>
    %61 = arith.subf %57, %60 : vector<2x8x8xf32>
    %62 = math.exp %61 : vector<2x8x8xf32>
    %cst_24 = arith.constant dense<0.000000e+00> : vector<2x8xf32>
    %63 = vector.multi_reduction <add>, %62, %cst_24 [2] : vector<2x8x8xf32> to vector<2x8xf32>
    %64 = vector.shape_cast %63 : vector<2x8xf32> to vector<2x8x1xf32>
    %65 = tpu.reciprocal %64 {approx = true} : vector<2x8x1xf32> -> vector<2x8x1xf32>
    %66 = vector.broadcast %65 : vector<2x8x1xf32> to vector<2x8x8xf32>
    %67 = arith.mulf %62, %66 : vector<2x8x8xf32>
    "tpu.trace_start"() <{level = 10 : i32, message = "bqk,bkd->bqd"}> : () -> ()
    %cst_25 = arith.constant dense<0.000000e+00> : vector<2x8x32xf32>
    %68 = tpu.matmul %67, %56, %cst_25 {dimension_numbers = #tpu.dot_dimension_numbers<[2], [1], [1], [2], [0, 0, 0, 1, 1, 2], [0], [0]>} : vector<2x8x8xf32>, vector<2x8x32xf32>, vector<2x8x32xf32> -> vector<2x8x32xf32>
    "tpu.trace_stop"() : () -> ()
    %69 = vector.shape_cast %68 : vector<2x8x32xf32> to vector<16x32xf32>
    %70 = arith.truncf %69 : vector<16x32xf32> to vector<16x32xbf16>
    %71 = vector.extract_strided_slice %12 {offsets = [64, 0], sizes = [32, 128], strides = [1, 1]} : vector<128x128xbf16> to vector<32x128xbf16>
    %cst_26 = arith.constant dense<0.000000e+00> : vector<16x128xf32>
    %72 = tpu.matmul %70, %71, %cst_26 {dimension_numbers = #tpu.dot_dimension_numbers<[1], [0], [0], [1], [0, 0, 1, 1], [], []>} : vector<16x32xbf16>, vector<32x128xbf16>, vector<16x128xf32> -> vector<16x128xf32>
    %73 = arith.addf %53, %72 : vector<16x128xf32>
    %74 = vector.extract_strided_slice %10 {offsets = [0, 0, 96], sizes = [2, 8, 32], strides = [1, 1, 1]} : vector<2x8x384xf32> to vector<2x8x32xf32>
    %75 = vector.extract_strided_slice %10 {offsets = [0, 0, 224], sizes = [2, 8, 32], strides = [1, 1, 1]} : vector<2x8x384xf32> to vector<2x8x32xf32>
    %76 = vector.extract_strided_slice %10 {offsets = [0, 0, 352], sizes = [2, 8, 32], strides = [1, 1, 1]} : vector<2x8x384xf32> to vector<2x8x32xf32>
    "tpu.trace_start"() <{level = 10 : i32, message = "bqd,bkd->bqk"}> : () -> ()
    %cst_27 = arith.constant dense<0.000000e+00> : vector<2x8x8xf32>
    %77 = tpu.matmul %74, %75, %cst_27 {dimension_numbers = #tpu.dot_dimension_numbers<[2], [2], [1], [1], [0, 0, 0, 1, 1, 1], [0], [0]>} : vector<2x8x32xf32>, vector<2x8x32xf32>, vector<2x8x8xf32> -> vector<2x8x8xf32>
    "tpu.trace_stop"() : () -> ()
    %cst_28 = arith.constant dense<0xFF800000> : vector<2x8xf32>
    %78 = vector.multi_reduction <maximumf>, %77, %cst_28 [2] : vector<2x8x8xf32> to vector<2x8xf32>
    %79 = vector.shape_cast %78 : vector<2x8xf32> to vector<2x8x1xf32>
    %80 = vector.broadcast %79 : vector<2x8x1xf32> to vector<2x8x8xf32>
    %81 = arith.subf %77, %80 : vector<2x8x8xf32>
    %82 = math.exp %81 : vector<2x8x8xf32>
    %cst_29 = arith.constant dense<0.000000e+00> : vector<2x8xf32>
    %83 = vector.multi_reduction <add>, %82, %cst_29 [2] : vector<2x8x8xf32> to vector<2x8xf32>
    %84 = vector.shape_cast %83 : vector<2x8xf32> to vector<2x8x1xf32>
    %85 = tpu.reciprocal %84 {approx = true} : vector<2x8x1xf32> -> vector<2x8x1xf32>
    %86 = vector.broadcast %85 : vector<2x8x1xf32> to vector<2x8x8xf32>
    %87 = arith.mulf %82, %86 : vector<2x8x8xf32>
    "tpu.trace_start"() <{level = 10 : i32, message = "bqk,bkd->bqd"}> : () -> ()
    %cst_30 = arith.constant dense<0.000000e+00> : vector<2x8x32xf32>
    %88 = tpu.matmul %87, %76, %cst_30 {dimension_numbers = #tpu.dot_dimension_numbers<[2], [1], [1], [2], [0, 0, 0, 1, 1, 2], [0], [0]>} : vector<2x8x8xf32>, vector<2x8x32xf32>, vector<2x8x32xf32> -> vector<2x8x32xf32>
    "tpu.trace_stop"() : () -> ()
    %89 = vector.shape_cast %88 : vector<2x8x32xf32> to vector<16x32xf32>
    %90 = arith.truncf %89 : vector<16x32xf32> to vector<16x32xbf16>
    %91 = vector.extract_strided_slice %12 {offsets = [96, 0], sizes = [32, 128], strides = [1, 1]} : vector<128x128xbf16> to vector<32x128xbf16>
    %cst_31 = arith.constant dense<0.000000e+00> : vector<16x128xf32>
    %92 = tpu.matmul %90, %91, %cst_31 {dimension_numbers = #tpu.dot_dimension_numbers<[1], [0], [0], [1], [0, 0, 1, 1], [], []>} : vector<16x32xbf16>, vector<32x128xbf16>, vector<16x128xf32> -> vector<16x128xf32>
    %93 = arith.addf %73, %92 : vector<16x128xf32>
    %c0_32 = arith.constant 0 : index
    %c0_33 = arith.constant 0 : index
    %c0_34 = arith.constant 0 : index
    %94 = vector.load %arg5[%c0_32, %c0_33, %c0_34] : memref<2x1x128xf32, #tpu.memory_space<vmem>>, vector<1x1x128xf32>
    %95 = vector.shape_cast %94 : vector<1x1x128xf32> to vector<1x128xf32>
    %96 = vector.broadcast %95 : vector<1x128xf32> to vector<16x128xf32>
    %97 = arith.addf %93, %96 : vector<16x128xf32>
    %98 = arith.addf %1, %97 : vector<16x128xf32>
    %c0_35 = arith.constant 0 : index
    %c0_36 = arith.constant 0 : index
    %c0_37 = arith.constant 0 : index
    %99 = vector.load %arg6[%c0_35, %c0_36, %c0_37] : memref<2x1x128xf32, #tpu.memory_space<vmem>>, vector<1x1x128xf32>
    %100 = vector.shape_cast %99 : vector<1x1x128xf32> to vector<1x128xf32>
    %c0_38 = arith.constant 0 : index
    %c0_39 = arith.constant 0 : index
    %c0_40 = arith.constant 0 : index
    %101 = vector.load %arg7[%c0_38, %c0_39, %c0_40] : memref<2x1x128xf32, #tpu.memory_space<vmem>>, vector<1x1x128xf32>
    %102 = vector.shape_cast %101 : vector<1x1x128xf32> to vector<1x128xf32>
    %cst_41 = arith.constant dense<0.000000e+00> : vector<16xf32>
    %103 = vector.multi_reduction <add>, %98, %cst_41 [1] : vector<16x128xf32> to vector<16xf32>
    %104 = vector.shape_cast %103 : vector<16xf32> to vector<16x1xf32>
    %cst_42 = arith.constant 1.280000e+02 : f32
    %105 = vector.broadcast %cst_42 : f32 to vector<16x1xf32>
    %106 = arith.divf %104, %105 : vector<16x1xf32>
    %107 = arith.mulf %98, %98 : vector<16x128xf32>
    %cst_43 = arith.constant dense<0.000000e+00> : vector<16xf32>
    %108 = vector.multi_reduction <add>, %107, %cst_43 [1] : vector<16x128xf32> to vector<16xf32>
    %109 = vector.shape_cast %108 : vector<16xf32> to vector<16x1xf32>
    %cst_44 = arith.constant 1.280000e+02 : f32
    %110 = vector.broadcast %cst_44 : f32 to vector<16x1xf32>
    %111 = arith.divf %109, %110 : vector<16x1xf32>
    %112 = arith.mulf %106, %106 : vector<16x1xf32>
    %113 = arith.subf %111, %112 : vector<16x1xf32>
    %cst_45 = arith.constant 0.000000e+00 : f32
    %114 = vector.broadcast %cst_45 : f32 to vector<16x1xf32>
    %115 = arith.maximumf %113, %114 : vector<16x1xf32>
    %116 = vector.broadcast %106 : vector<16x1xf32> to vector<16x128xf32>
    %117 = arith.subf %98, %116 : vector<16x128xf32>
    %cst_46 = arith.constant 9.99999974E-6 : f32
    %118 = vector.broadcast %cst_46 : f32 to vector<16x1xf32>
    %119 = arith.addf %115, %118 : vector<16x1xf32>
    %120 = math.rsqrt %119 : vector<16x1xf32>
    %121 = vector.broadcast %120 : vector<16x1xf32> to vector<16x128xf32>
    %122 = arith.mulf %117, %121 : vector<16x128xf32>
    %123 = vector.broadcast %100 : vector<1x128xf32> to vector<16x128xf32>
    %124 = arith.mulf %122, %123 : vector<16x128xf32>
    %125 = vector.broadcast %102 : vector<1x128xf32> to vector<16x128xf32>
    %126 = arith.addf %124, %125 : vector<16x128xf32>
    %127 = arith.truncf %126 : vector<16x128xf32> to vector<16x128xbf16>
    %c0_47 = arith.constant 0 : index
    %c0_48 = arith.constant 0 : index
    %c0_49 = arith.constant 0 : index
    %128 = vector.load %arg8[%c0_47, %c0_48, %c0_49] : memref<2x128x256xbf16, #tpu.memory_space<vmem>>, vector<1x128x256xbf16>
    %129 = vector.shape_cast %128 : vector<1x128x256xbf16> to vector<128x256xbf16>
    %cst_50 = arith.constant dense<0.000000e+00> : vector<16x256xf32>
    %130 = tpu.matmul %127, %129, %cst_50 {dimension_numbers = #tpu.dot_dimension_numbers<[1], [0], [0], [1], [0, 0, 1, 1], [], []>} : vector<16x128xbf16>, vector<128x256xbf16>, vector<16x256xf32> -> vector<16x256xf32>
    %c0_51 = arith.constant 0 : index
    %c0_52 = arith.constant 0 : index
    %c0_53 = arith.constant 0 : index
    %131 = vector.load %arg9[%c0_51, %c0_52, %c0_53] : memref<2x1x256xf32, #tpu.memory_space<vmem>>, vector<1x1x256xf32>
    %132 = vector.shape_cast %131 : vector<1x1x256xf32> to vector<1x256xf32>
    %133 = vector.broadcast %132 : vector<1x256xf32> to vector<16x256xf32>
    %134 = arith.addf %130, %133 : vector<16x256xf32>
    %cst_54 = arith.constant 0.000000e+00 : f32
    %135 = vector.broadcast %cst_54 : f32 to vector<16x256xf32>
    %136 = arith.maximumf %134, %135 : vector<16x256xf32>
    %137 = arith.truncf %136 : vector<16x256xf32> to vector<16x256xbf16>
    %c0_55 = arith.constant 0 : index
    %c0_56 = arith.constant 0 : index
    %c0_57 = arith.constant 0 : index
    %138 = vector.load %arg10[%c0_55, %c0_56, %c0_57] : memref<2x256x128xbf16, #tpu.memory_space<vmem>>, vector<1x256x128xbf16>
    %139 = vector.shape_cast %138 : vector<1x256x128xbf16> to vector<256x128xbf16>
    %cst_58 = arith.constant dense<0.000000e+00> : vector<16x128xf32>
    %140 = tpu.matmul %137, %139, %cst_58 {dimension_numbers = #tpu.dot_dimension_numbers<[1], [0], [0], [1], [0, 0, 1, 1], [], []>} : vector<16x256xbf16>, vector<256x128xbf16>, vector<16x128xf32> -> vector<16x128xf32>
    %c0_59 = arith.constant 0 : index
    %c0_60 = arith.constant 0 : index
    %c0_61 = arith.constant 0 : index
    %141 = vector.load %arg11[%c0_59, %c0_60, %c0_61] : memref<2x1x128xf32, #tpu.memory_space<vmem>>, vector<1x1x128xf32>
    %142 = vector.shape_cast %141 : vector<1x1x128xf32> to vector<1x128xf32>
    %143 = vector.broadcast %142 : vector<1x128xf32> to vector<16x128xf32>
    %144 = arith.addf %140, %143 : vector<16x128xf32>
    %145 = arith.addf %126, %144 : vector<16x128xf32>
    %c0_62 = arith.constant 0 : index
    %c0_63 = arith.constant 0 : index
    %c0_64 = arith.constant 0 : index
    %146 = vector.load %arg12[%c0_62, %c0_63, %c0_64] : memref<2x1x128xf32, #tpu.memory_space<vmem>>, vector<1x1x128xf32>
    %147 = vector.shape_cast %146 : vector<1x1x128xf32> to vector<1x128xf32>
    %c0_65 = arith.constant 0 : index
    %c0_66 = arith.constant 0 : index
    %c0_67 = arith.constant 0 : index
    %148 = vector.load %arg13[%c0_65, %c0_66, %c0_67] : memref<2x1x128xf32, #tpu.memory_space<vmem>>, vector<1x1x128xf32>
    %149 = vector.shape_cast %148 : vector<1x1x128xf32> to vector<1x128xf32>
    %cst_68 = arith.constant dense<0.000000e+00> : vector<16xf32>
    %150 = vector.multi_reduction <add>, %145, %cst_68 [1] : vector<16x128xf32> to vector<16xf32>
    %151 = vector.shape_cast %150 : vector<16xf32> to vector<16x1xf32>
    %cst_69 = arith.constant 1.280000e+02 : f32
    %152 = vector.broadcast %cst_69 : f32 to vector<16x1xf32>
    %153 = arith.divf %151, %152 : vector<16x1xf32>
    %154 = arith.mulf %145, %145 : vector<16x128xf32>
    %cst_70 = arith.constant dense<0.000000e+00> : vector<16xf32>
    %155 = vector.multi_reduction <add>, %154, %cst_70 [1] : vector<16x128xf32> to vector<16xf32>
    %156 = vector.shape_cast %155 : vector<16xf32> to vector<16x1xf32>
    %cst_71 = arith.constant 1.280000e+02 : f32
    %157 = vector.broadcast %cst_71 : f32 to vector<16x1xf32>
    %158 = arith.divf %156, %157 : vector<16x1xf32>
    %159 = arith.mulf %153, %153 : vector<16x1xf32>
    %160 = arith.subf %158, %159 : vector<16x1xf32>
    %cst_72 = arith.constant 0.000000e+00 : f32
    %161 = vector.broadcast %cst_72 : f32 to vector<16x1xf32>
    %162 = arith.maximumf %160, %161 : vector<16x1xf32>
    %163 = vector.broadcast %153 : vector<16x1xf32> to vector<16x128xf32>
    %164 = arith.subf %145, %163 : vector<16x128xf32>
    %cst_73 = arith.constant 9.99999974E-6 : f32
    %165 = vector.broadcast %cst_73 : f32 to vector<16x1xf32>
    %166 = arith.addf %162, %165 : vector<16x1xf32>
    %167 = math.rsqrt %166 : vector<16x1xf32>
    %168 = vector.broadcast %167 : vector<16x1xf32> to vector<16x128xf32>
    %169 = arith.mulf %164, %168 : vector<16x128xf32>
    %170 = vector.broadcast %147 : vector<1x128xf32> to vector<16x128xf32>
    %171 = arith.mulf %169, %170 : vector<16x128xf32>
    %172 = vector.broadcast %149 : vector<1x128xf32> to vector<16x128xf32>
    %173 = arith.addf %171, %172 : vector<16x128xf32>
    %174 = arith.truncf %173 : vector<16x128xf32> to vector<16x128xbf16>
    %c1 = arith.constant 1 : index
    %c0_74 = arith.constant 0 : index
    %c0_75 = arith.constant 0 : index
    %175 = vector.load %arg2[%c1, %c0_74, %c0_75] : memref<2x128x384xbf16, #tpu.memory_space<vmem>>, vector<1x128x384xbf16>
    %176 = vector.shape_cast %175 : vector<1x128x384xbf16> to vector<128x384xbf16>
    %cst_76 = arith.constant dense<0.000000e+00> : vector<16x384xf32>
    %177 = tpu.matmul %174, %176, %cst_76 {dimension_numbers = #tpu.dot_dimension_numbers<[1], [0], [0], [1], [0, 0, 1, 1], [], []>} : vector<16x128xbf16>, vector<128x384xbf16>, vector<16x384xf32> -> vector<16x384xf32>
    %c1_77 = arith.constant 1 : index
    %c0_78 = arith.constant 0 : index
    %c0_79 = arith.constant 0 : index
    %178 = vector.load %arg3[%c1_77, %c0_78, %c0_79] : memref<2x1x384xf32, #tpu.memory_space<vmem>>, vector<1x1x384xf32>
    %179 = vector.shape_cast %178 : vector<1x1x384xf32> to vector<1x384xf32>
    %180 = vector.broadcast %179 : vector<1x384xf32> to vector<16x384xf32>
    %181 = arith.addf %177, %180 : vector<16x384xf32>
    %182 = vector.shape_cast %181 : vector<16x384xf32> to vector<2x8x384xf32>
    %c1_80 = arith.constant 1 : index
    %c0_81 = arith.constant 0 : index
    %c0_82 = arith.constant 0 : index
    %183 = vector.load %arg4[%c1_80, %c0_81, %c0_82] : memref<2x128x128xbf16, #tpu.memory_space<vmem>>, vector<1x128x128xbf16>
    %184 = vector.shape_cast %183 : vector<1x128x128xbf16> to vector<128x128xbf16>
    %cst_83 = arith.constant 0.000000e+00 : f32
    %185 = vector.broadcast %cst_83 : f32 to vector<16x128xf32>
    %186 = vector.extract_strided_slice %182 {offsets = [0, 0, 0], sizes = [2, 8, 32], strides = [1, 1, 1]} : vector<2x8x384xf32> to vector<2x8x32xf32>
    %187 = vector.extract_strided_slice %182 {offsets = [0, 0, 128], sizes = [2, 8, 32], strides = [1, 1, 1]} : vector<2x8x384xf32> to vector<2x8x32xf32>
    %188 = vector.extract_strided_slice %182 {offsets = [0, 0, 256], sizes = [2, 8, 32], strides = [1, 1, 1]} : vector<2x8x384xf32> to vector<2x8x32xf32>
    "tpu.trace_start"() <{level = 10 : i32, message = "bqd,bkd->bqk"}> : () -> ()
    %cst_84 = arith.constant dense<0.000000e+00> : vector<2x8x8xf32>
    %189 = tpu.matmul %186, %187, %cst_84 {dimension_numbers = #tpu.dot_dimension_numbers<[2], [2], [1], [1], [0, 0, 0, 1, 1, 1], [0], [0]>} : vector<2x8x32xf32>, vector<2x8x32xf32>, vector<2x8x8xf32> -> vector<2x8x8xf32>
    "tpu.trace_stop"() : () -> ()
    %cst_85 = arith.constant dense<0xFF800000> : vector<2x8xf32>
    %190 = vector.multi_reduction <maximumf>, %189, %cst_85 [2] : vector<2x8x8xf32> to vector<2x8xf32>
    %191 = vector.shape_cast %190 : vector<2x8xf32> to vector<2x8x1xf32>
    %192 = vector.broadcast %191 : vector<2x8x1xf32> to vector<2x8x8xf32>
    %193 = arith.subf %189, %192 : vector<2x8x8xf32>
    %194 = math.exp %193 : vector<2x8x8xf32>
    %cst_86 = arith.constant dense<0.000000e+00> : vector<2x8xf32>
    %195 = vector.multi_reduction <add>, %194, %cst_86 [2] : vector<2x8x8xf32> to vector<2x8xf32>
    %196 = vector.shape_cast %195 : vector<2x8xf32> to vector<2x8x1xf32>
    %197 = tpu.reciprocal %196 {approx = true} : vector<2x8x1xf32> -> vector<2x8x1xf32>
    %198 = vector.broadcast %197 : vector<2x8x1xf32> to vector<2x8x8xf32>
    %199 = arith.mulf %194, %198 : vector<2x8x8xf32>
    "tpu.trace_start"() <{level = 10 : i32, message = "bqk,bkd->bqd"}> : () -> ()
    %cst_87 = arith.constant dense<0.000000e+00> : vector<2x8x32xf32>
    %200 = tpu.matmul %199, %188, %cst_87 {dimension_numbers = #tpu.dot_dimension_numbers<[2], [1], [1], [2], [0, 0, 0, 1, 1, 2], [0], [0]>} : vector<2x8x8xf32>, vector<2x8x32xf32>, vector<2x8x32xf32> -> vector<2x8x32xf32>
    "tpu.trace_stop"() : () -> ()
    %201 = vector.shape_cast %200 : vector<2x8x32xf32> to vector<16x32xf32>
    %202 = arith.truncf %201 : vector<16x32xf32> to vector<16x32xbf16>
    %203 = vector.extract_strided_slice %184 {offsets = [0, 0], sizes = [32, 128], strides = [1, 1]} : vector<128x128xbf16> to vector<32x128xbf16>
    %cst_88 = arith.constant dense<0.000000e+00> : vector<16x128xf32>
    %204 = tpu.matmul %202, %203, %cst_88 {dimension_numbers = #tpu.dot_dimension_numbers<[1], [0], [0], [1], [0, 0, 1, 1], [], []>} : vector<16x32xbf16>, vector<32x128xbf16>, vector<16x128xf32> -> vector<16x128xf32>
    %205 = arith.addf %185, %204 : vector<16x128xf32>
    %206 = vector.extract_strided_slice %182 {offsets = [0, 0, 32], sizes = [2, 8, 32], strides = [1, 1, 1]} : vector<2x8x384xf32> to vector<2x8x32xf32>
    %207 = vector.extract_strided_slice %182 {offsets = [0, 0, 160], sizes = [2, 8, 32], strides = [1, 1, 1]} : vector<2x8x384xf32> to vector<2x8x32xf32>
    %208 = vector.extract_strided_slice %182 {offsets = [0, 0, 288], sizes = [2, 8, 32], strides = [1, 1, 1]} : vector<2x8x384xf32> to vector<2x8x32xf32>
    "tpu.trace_start"() <{level = 10 : i32, message = "bqd,bkd->bqk"}> : () -> ()
    %cst_89 = arith.constant dense<0.000000e+00> : vector<2x8x8xf32>
    %209 = tpu.matmul %206, %207, %cst_89 {dimension_numbers = #tpu.dot_dimension_numbers<[2], [2], [1], [1], [0, 0, 0, 1, 1, 1], [0], [0]>} : vector<2x8x32xf32>, vector<2x8x32xf32>, vector<2x8x8xf32> -> vector<2x8x8xf32>
    "tpu.trace_stop"() : () -> ()
    %cst_90 = arith.constant dense<0xFF800000> : vector<2x8xf32>
    %210 = vector.multi_reduction <maximumf>, %209, %cst_90 [2] : vector<2x8x8xf32> to vector<2x8xf32>
    %211 = vector.shape_cast %210 : vector<2x8xf32> to vector<2x8x1xf32>
    %212 = vector.broadcast %211 : vector<2x8x1xf32> to vector<2x8x8xf32>
    %213 = arith.subf %209, %212 : vector<2x8x8xf32>
    %214 = math.exp %213 : vector<2x8x8xf32>
    %cst_91 = arith.constant dense<0.000000e+00> : vector<2x8xf32>
    %215 = vector.multi_reduction <add>, %214, %cst_91 [2] : vector<2x8x8xf32> to vector<2x8xf32>
    %216 = vector.shape_cast %215 : vector<2x8xf32> to vector<2x8x1xf32>
    %217 = tpu.reciprocal %216 {approx = true} : vector<2x8x1xf32> -> vector<2x8x1xf32>
    %218 = vector.broadcast %217 : vector<2x8x1xf32> to vector<2x8x8xf32>
    %219 = arith.mulf %214, %218 : vector<2x8x8xf32>
    "tpu.trace_start"() <{level = 10 : i32, message = "bqk,bkd->bqd"}> : () -> ()
    %cst_92 = arith.constant dense<0.000000e+00> : vector<2x8x32xf32>
    %220 = tpu.matmul %219, %208, %cst_92 {dimension_numbers = #tpu.dot_dimension_numbers<[2], [1], [1], [2], [0, 0, 0, 1, 1, 2], [0], [0]>} : vector<2x8x8xf32>, vector<2x8x32xf32>, vector<2x8x32xf32> -> vector<2x8x32xf32>
    "tpu.trace_stop"() : () -> ()
    %221 = vector.shape_cast %220 : vector<2x8x32xf32> to vector<16x32xf32>
    %222 = arith.truncf %221 : vector<16x32xf32> to vector<16x32xbf16>
    %223 = vector.extract_strided_slice %184 {offsets = [32, 0], sizes = [32, 128], strides = [1, 1]} : vector<128x128xbf16> to vector<32x128xbf16>
    %cst_93 = arith.constant dense<0.000000e+00> : vector<16x128xf32>
    %224 = tpu.matmul %222, %223, %cst_93 {dimension_numbers = #tpu.dot_dimension_numbers<[1], [0], [0], [1], [0, 0, 1, 1], [], []>} : vector<16x32xbf16>, vector<32x128xbf16>, vector<16x128xf32> -> vector<16x128xf32>
    %225 = arith.addf %205, %224 : vector<16x128xf32>
    %226 = vector.extract_strided_slice %182 {offsets = [0, 0, 64], sizes = [2, 8, 32], strides = [1, 1, 1]} : vector<2x8x384xf32> to vector<2x8x32xf32>
    %227 = vector.extract_strided_slice %182 {offsets = [0, 0, 192], sizes = [2, 8, 32], strides = [1, 1, 1]} : vector<2x8x384xf32> to vector<2x8x32xf32>
    %228 = vector.extract_strided_slice %182 {offsets = [0, 0, 320], sizes = [2, 8, 32], strides = [1, 1, 1]} : vector<2x8x384xf32> to vector<2x8x32xf32>
    "tpu.trace_start"() <{level = 10 : i32, message = "bqd,bkd->bqk"}> : () -> ()
    %cst_94 = arith.constant dense<0.000000e+00> : vector<2x8x8xf32>
    %229 = tpu.matmul %226, %227, %cst_94 {dimension_numbers = #tpu.dot_dimension_numbers<[2], [2], [1], [1], [0, 0, 0, 1, 1, 1], [0], [0]>} : vector<2x8x32xf32>, vector<2x8x32xf32>, vector<2x8x8xf32> -> vector<2x8x8xf32>
    "tpu.trace_stop"() : () -> ()
    %cst_95 = arith.constant dense<0xFF800000> : vector<2x8xf32>
    %230 = vector.multi_reduction <maximumf>, %229, %cst_95 [2] : vector<2x8x8xf32> to vector<2x8xf32>
    %231 = vector.shape_cast %230 : vector<2x8xf32> to vector<2x8x1xf32>
    %232 = vector.broadcast %231 : vector<2x8x1xf32> to vector<2x8x8xf32>
    %233 = arith.subf %229, %232 : vector<2x8x8xf32>
    %234 = math.exp %233 : vector<2x8x8xf32>
    %cst_96 = arith.constant dense<0.000000e+00> : vector<2x8xf32>
    %235 = vector.multi_reduction <add>, %234, %cst_96 [2] : vector<2x8x8xf32> to vector<2x8xf32>
    %236 = vector.shape_cast %235 : vector<2x8xf32> to vector<2x8x1xf32>
    %237 = tpu.reciprocal %236 {approx = true} : vector<2x8x1xf32> -> vector<2x8x1xf32>
    %238 = vector.broadcast %237 : vector<2x8x1xf32> to vector<2x8x8xf32>
    %239 = arith.mulf %234, %238 : vector<2x8x8xf32>
    "tpu.trace_start"() <{level = 10 : i32, message = "bqk,bkd->bqd"}> : () -> ()
    %cst_97 = arith.constant dense<0.000000e+00> : vector<2x8x32xf32>
    %240 = tpu.matmul %239, %228, %cst_97 {dimension_numbers = #tpu.dot_dimension_numbers<[2], [1], [1], [2], [0, 0, 0, 1, 1, 2], [0], [0]>} : vector<2x8x8xf32>, vector<2x8x32xf32>, vector<2x8x32xf32> -> vector<2x8x32xf32>
    "tpu.trace_stop"() : () -> ()
    %241 = vector.shape_cast %240 : vector<2x8x32xf32> to vector<16x32xf32>
    %242 = arith.truncf %241 : vector<16x32xf32> to vector<16x32xbf16>
    %243 = vector.extract_strided_slice %184 {offsets = [64, 0], sizes = [32, 128], strides = [1, 1]} : vector<128x128xbf16> to vector<32x128xbf16>
    %cst_98 = arith.constant dense<0.000000e+00> : vector<16x128xf32>
    %244 = tpu.matmul %242, %243, %cst_98 {dimension_numbers = #tpu.dot_dimension_numbers<[1], [0], [0], [1], [0, 0, 1, 1], [], []>} : vector<16x32xbf16>, vector<32x128xbf16>, vector<16x128xf32> -> vector<16x128xf32>
    %245 = arith.addf %225, %244 : vector<16x128xf32>
    %246 = vector.extract_strided_slice %182 {offsets = [0, 0, 96], sizes = [2, 8, 32], strides = [1, 1, 1]} : vector<2x8x384xf32> to vector<2x8x32xf32>
    %247 = vector.extract_strided_slice %182 {offsets = [0, 0, 224], sizes = [2, 8, 32], strides = [1, 1, 1]} : vector<2x8x384xf32> to vector<2x8x32xf32>
    %248 = vector.extract_strided_slice %182 {offsets = [0, 0, 352], sizes = [2, 8, 32], strides = [1, 1, 1]} : vector<2x8x384xf32> to vector<2x8x32xf32>
    "tpu.trace_start"() <{level = 10 : i32, message = "bqd,bkd->bqk"}> : () -> ()
    %cst_99 = arith.constant dense<0.000000e+00> : vector<2x8x8xf32>
    %249 = tpu.matmul %246, %247, %cst_99 {dimension_numbers = #tpu.dot_dimension_numbers<[2], [2], [1], [1], [0, 0, 0, 1, 1, 1], [0], [0]>} : vector<2x8x32xf32>, vector<2x8x32xf32>, vector<2x8x8xf32> -> vector<2x8x8xf32>
    "tpu.trace_stop"() : () -> ()
    %cst_100 = arith.constant dense<0xFF800000> : vector<2x8xf32>
    %250 = vector.multi_reduction <maximumf>, %249, %cst_100 [2] : vector<2x8x8xf32> to vector<2x8xf32>
    %251 = vector.shape_cast %250 : vector<2x8xf32> to vector<2x8x1xf32>
    %252 = vector.broadcast %251 : vector<2x8x1xf32> to vector<2x8x8xf32>
    %253 = arith.subf %249, %252 : vector<2x8x8xf32>
    %254 = math.exp %253 : vector<2x8x8xf32>
    %cst_101 = arith.constant dense<0.000000e+00> : vector<2x8xf32>
    %255 = vector.multi_reduction <add>, %254, %cst_101 [2] : vector<2x8x8xf32> to vector<2x8xf32>
    %256 = vector.shape_cast %255 : vector<2x8xf32> to vector<2x8x1xf32>
    %257 = tpu.reciprocal %256 {approx = true} : vector<2x8x1xf32> -> vector<2x8x1xf32>
    %258 = vector.broadcast %257 : vector<2x8x1xf32> to vector<2x8x8xf32>
    %259 = arith.mulf %254, %258 : vector<2x8x8xf32>
    "tpu.trace_start"() <{level = 10 : i32, message = "bqk,bkd->bqd"}> : () -> ()
    %cst_102 = arith.constant dense<0.000000e+00> : vector<2x8x32xf32>
    %260 = tpu.matmul %259, %248, %cst_102 {dimension_numbers = #tpu.dot_dimension_numbers<[2], [1], [1], [2], [0, 0, 0, 1, 1, 2], [0], [0]>} : vector<2x8x8xf32>, vector<2x8x32xf32>, vector<2x8x32xf32> -> vector<2x8x32xf32>
    "tpu.trace_stop"() : () -> ()
    %261 = vector.shape_cast %260 : vector<2x8x32xf32> to vector<16x32xf32>
    %262 = arith.truncf %261 : vector<16x32xf32> to vector<16x32xbf16>
    %263 = vector.extract_strided_slice %184 {offsets = [96, 0], sizes = [32, 128], strides = [1, 1]} : vector<128x128xbf16> to vector<32x128xbf16>
    %cst_103 = arith.constant dense<0.000000e+00> : vector<16x128xf32>
    %264 = tpu.matmul %262, %263, %cst_103 {dimension_numbers = #tpu.dot_dimension_numbers<[1], [0], [0], [1], [0, 0, 1, 1], [], []>} : vector<16x32xbf16>, vector<32x128xbf16>, vector<16x128xf32> -> vector<16x128xf32>
    %265 = arith.addf %245, %264 : vector<16x128xf32>
    %c1_104 = arith.constant 1 : index
    %c0_105 = arith.constant 0 : index
    %c0_106 = arith.constant 0 : index
    %266 = vector.load %arg5[%c1_104, %c0_105, %c0_106] : memref<2x1x128xf32, #tpu.memory_space<vmem>>, vector<1x1x128xf32>
    %267 = vector.shape_cast %266 : vector<1x1x128xf32> to vector<1x128xf32>
    %268 = vector.broadcast %267 : vector<1x128xf32> to vector<16x128xf32>
    %269 = arith.addf %265, %268 : vector<16x128xf32>
    %270 = arith.addf %173, %269 : vector<16x128xf32>
    %c1_107 = arith.constant 1 : index
    %c0_108 = arith.constant 0 : index
    %c0_109 = arith.constant 0 : index
    %271 = vector.load %arg6[%c1_107, %c0_108, %c0_109] : memref<2x1x128xf32, #tpu.memory_space<vmem>>, vector<1x1x128xf32>
    %272 = vector.shape_cast %271 : vector<1x1x128xf32> to vector<1x128xf32>
    %c1_110 = arith.constant 1 : index
    %c0_111 = arith.constant 0 : index
    %c0_112 = arith.constant 0 : index
    %273 = vector.load %arg7[%c1_110, %c0_111, %c0_112] : memref<2x1x128xf32, #tpu.memory_space<vmem>>, vector<1x1x128xf32>
    %274 = vector.shape_cast %273 : vector<1x1x128xf32> to vector<1x128xf32>
    %cst_113 = arith.constant dense<0.000000e+00> : vector<16xf32>
    %275 = vector.multi_reduction <add>, %270, %cst_113 [1] : vector<16x128xf32> to vector<16xf32>
    %276 = vector.shape_cast %275 : vector<16xf32> to vector<16x1xf32>
    %cst_114 = arith.constant 1.280000e+02 : f32
    %277 = vector.broadcast %cst_114 : f32 to vector<16x1xf32>
    %278 = arith.divf %276, %277 : vector<16x1xf32>
    %279 = arith.mulf %270, %270 : vector<16x128xf32>
    %cst_115 = arith.constant dense<0.000000e+00> : vector<16xf32>
    %280 = vector.multi_reduction <add>, %279, %cst_115 [1] : vector<16x128xf32> to vector<16xf32>
    %281 = vector.shape_cast %280 : vector<16xf32> to vector<16x1xf32>
    %cst_116 = arith.constant 1.280000e+02 : f32
    %282 = vector.broadcast %cst_116 : f32 to vector<16x1xf32>
    %283 = arith.divf %281, %282 : vector<16x1xf32>
    %284 = arith.mulf %278, %278 : vector<16x1xf32>
    %285 = arith.subf %283, %284 : vector<16x1xf32>
    %cst_117 = arith.constant 0.000000e+00 : f32
    %286 = vector.broadcast %cst_117 : f32 to vector<16x1xf32>
    %287 = arith.maximumf %285, %286 : vector<16x1xf32>
    %288 = vector.broadcast %278 : vector<16x1xf32> to vector<16x128xf32>
    %289 = arith.subf %270, %288 : vector<16x128xf32>
    %cst_118 = arith.constant 9.99999974E-6 : f32
    %290 = vector.broadcast %cst_118 : f32 to vector<16x1xf32>
    %291 = arith.addf %287, %290 : vector<16x1xf32>
    %292 = math.rsqrt %291 : vector<16x1xf32>
    %293 = vector.broadcast %292 : vector<16x1xf32> to vector<16x128xf32>
    %294 = arith.mulf %289, %293 : vector<16x128xf32>
    %295 = vector.broadcast %272 : vector<1x128xf32> to vector<16x128xf32>
    %296 = arith.mulf %294, %295 : vector<16x128xf32>
    %297 = vector.broadcast %274 : vector<1x128xf32> to vector<16x128xf32>
    %298 = arith.addf %296, %297 : vector<16x128xf32>
    %299 = arith.truncf %298 : vector<16x128xf32> to vector<16x128xbf16>
    %c1_119 = arith.constant 1 : index
    %c0_120 = arith.constant 0 : index
    %c0_121 = arith.constant 0 : index
    %300 = vector.load %arg8[%c1_119, %c0_120, %c0_121] : memref<2x128x256xbf16, #tpu.memory_space<vmem>>, vector<1x128x256xbf16>
    %301 = vector.shape_cast %300 : vector<1x128x256xbf16> to vector<128x256xbf16>
    %cst_122 = arith.constant dense<0.000000e+00> : vector<16x256xf32>
    %302 = tpu.matmul %299, %301, %cst_122 {dimension_numbers = #tpu.dot_dimension_numbers<[1], [0], [0], [1], [0, 0, 1, 1], [], []>} : vector<16x128xbf16>, vector<128x256xbf16>, vector<16x256xf32> -> vector<16x256xf32>
    %c1_123 = arith.constant 1 : index
    %c0_124 = arith.constant 0 : index
    %c0_125 = arith.constant 0 : index
    %303 = vector.load %arg9[%c1_123, %c0_124, %c0_125] : memref<2x1x256xf32, #tpu.memory_space<vmem>>, vector<1x1x256xf32>
    %304 = vector.shape_cast %303 : vector<1x1x256xf32> to vector<1x256xf32>
    %305 = vector.broadcast %304 : vector<1x256xf32> to vector<16x256xf32>
    %306 = arith.addf %302, %305 : vector<16x256xf32>
    %cst_126 = arith.constant 0.000000e+00 : f32
    %307 = vector.broadcast %cst_126 : f32 to vector<16x256xf32>
    %308 = arith.maximumf %306, %307 : vector<16x256xf32>
    %309 = arith.truncf %308 : vector<16x256xf32> to vector<16x256xbf16>
    %c1_127 = arith.constant 1 : index
    %c0_128 = arith.constant 0 : index
    %c0_129 = arith.constant 0 : index
    %310 = vector.load %arg10[%c1_127, %c0_128, %c0_129] : memref<2x256x128xbf16, #tpu.memory_space<vmem>>, vector<1x256x128xbf16>
    %311 = vector.shape_cast %310 : vector<1x256x128xbf16> to vector<256x128xbf16>
    %cst_130 = arith.constant dense<0.000000e+00> : vector<16x128xf32>
    %312 = tpu.matmul %309, %311, %cst_130 {dimension_numbers = #tpu.dot_dimension_numbers<[1], [0], [0], [1], [0, 0, 1, 1], [], []>} : vector<16x256xbf16>, vector<256x128xbf16>, vector<16x128xf32> -> vector<16x128xf32>
    %c1_131 = arith.constant 1 : index
    %c0_132 = arith.constant 0 : index
    %c0_133 = arith.constant 0 : index
    %313 = vector.load %arg11[%c1_131, %c0_132, %c0_133] : memref<2x1x128xf32, #tpu.memory_space<vmem>>, vector<1x1x128xf32>
    %314 = vector.shape_cast %313 : vector<1x1x128xf32> to vector<1x128xf32>
    %315 = vector.broadcast %314 : vector<1x128xf32> to vector<16x128xf32>
    %316 = arith.addf %312, %315 : vector<16x128xf32>
    %317 = arith.addf %298, %316 : vector<16x128xf32>
    %c1_134 = arith.constant 1 : index
    %c0_135 = arith.constant 0 : index
    %c0_136 = arith.constant 0 : index
    %318 = vector.load %arg12[%c1_134, %c0_135, %c0_136] : memref<2x1x128xf32, #tpu.memory_space<vmem>>, vector<1x1x128xf32>
    %319 = vector.shape_cast %318 : vector<1x1x128xf32> to vector<1x128xf32>
    %c1_137 = arith.constant 1 : index
    %c0_138 = arith.constant 0 : index
    %c0_139 = arith.constant 0 : index
    %320 = vector.load %arg13[%c1_137, %c0_138, %c0_139] : memref<2x1x128xf32, #tpu.memory_space<vmem>>, vector<1x1x128xf32>
    %321 = vector.shape_cast %320 : vector<1x1x128xf32> to vector<1x128xf32>
    %cst_140 = arith.constant dense<0.000000e+00> : vector<16xf32>
    %322 = vector.multi_reduction <add>, %317, %cst_140 [1] : vector<16x128xf32> to vector<16xf32>
    %323 = vector.shape_cast %322 : vector<16xf32> to vector<16x1xf32>
    %cst_141 = arith.constant 1.280000e+02 : f32
    %324 = vector.broadcast %cst_141 : f32 to vector<16x1xf32>
    %325 = arith.divf %323, %324 : vector<16x1xf32>
    %326 = arith.mulf %317, %317 : vector<16x128xf32>
    %cst_142 = arith.constant dense<0.000000e+00> : vector<16xf32>
    %327 = vector.multi_reduction <add>, %326, %cst_142 [1] : vector<16x128xf32> to vector<16xf32>
    %328 = vector.shape_cast %327 : vector<16xf32> to vector<16x1xf32>
    %cst_143 = arith.constant 1.280000e+02 : f32
    %329 = vector.broadcast %cst_143 : f32 to vector<16x1xf32>
    %330 = arith.divf %328, %329 : vector<16x1xf32>
    %331 = arith.mulf %325, %325 : vector<16x1xf32>
    %332 = arith.subf %330, %331 : vector<16x1xf32>
    %cst_144 = arith.constant 0.000000e+00 : f32
    %333 = vector.broadcast %cst_144 : f32 to vector<16x1xf32>
    %334 = arith.maximumf %332, %333 : vector<16x1xf32>
    %335 = vector.broadcast %325 : vector<16x1xf32> to vector<16x128xf32>
    %336 = arith.subf %317, %335 : vector<16x128xf32>
    %cst_145 = arith.constant 9.99999974E-6 : f32
    %337 = vector.broadcast %cst_145 : f32 to vector<16x1xf32>
    %338 = arith.addf %334, %337 : vector<16x1xf32>
    %339 = math.rsqrt %338 : vector<16x1xf32>
    %340 = vector.broadcast %339 : vector<16x1xf32> to vector<16x128xf32>
    %341 = arith.mulf %336, %340 : vector<16x128xf32>
    %342 = vector.broadcast %319 : vector<1x128xf32> to vector<16x128xf32>
    %343 = arith.mulf %341, %342 : vector<16x128xf32>
    %344 = vector.broadcast %321 : vector<1x128xf32> to vector<16x128xf32>
    %345 = arith.addf %343, %344 : vector<16x128xf32>
    %346 = vector.shape_cast %345 : vector<16x128xf32> to vector<2x8x128xf32>
    %c0_146 = arith.constant 0 : index
    %c0_147 = arith.constant 0 : index
    %c0_148 = arith.constant 0 : index
    %347 = vector.load %arg14[%c0_146, %c0_147, %c0_148] : memref<2x8x128xf32, #tpu.memory_space<vmem>>, vector<2x8x128xf32>
    tpu.vector_store %arg14[%c0_146, %c0_147, %c0_148], %346 {strides = array<i32>} : memref<2x8x128xf32, #tpu.memory_space<vmem>>, vector<2x8x128xf32>,
    return
  }
  func.func @transform_0(%arg0: i32) -> (i32, i32, i32) {
    %c0_i32 = arith.constant 0 : i32
    %c0_i32_0 = arith.constant 0 : i32
    %c0_i32_1 = arith.constant 0 : i32
    return %arg0, %c0_i32, %c0_i32_0 : i32, i32, i32
  }
  func.func @transform_1(%arg0: i32) -> (i32, i32, i32) {
    %c0_i32 = arith.constant 0 : i32
    %c0_i32_0 = arith.constant 0 : i32
    %c0_i32_1 = arith.constant 0 : i32
    %c0_i32_2 = arith.constant 0 : i32
    return %c0_i32, %c0_i32_0, %c0_i32_1 : i32, i32, i32
  }
  func.func @transform_2(%arg0: i32) -> (i32, i32, i32) {
    %c0_i32 = arith.constant 0 : i32
    %c0_i32_0 = arith.constant 0 : i32
    %c0_i32_1 = arith.constant 0 : i32
    %c0_i32_2 = arith.constant 0 : i32
    return %c0_i32, %c0_i32_0, %c0_i32_1 : i32, i32, i32
  }
  func.func @transform_3(%arg0: i32) -> (i32, i32, i32) {
    %c0_i32 = arith.constant 0 : i32
    %c0_i32_0 = arith.constant 0 : i32
    %c0_i32_1 = arith.constant 0 : i32
    %c0_i32_2 = arith.constant 0 : i32
    return %c0_i32, %c0_i32_0, %c0_i32_1 : i32, i32, i32
  }
  func.func @transform_4(%arg0: i32) -> (i32, i32, i32) {
    %c0_i32 = arith.constant 0 : i32
    %c0_i32_0 = arith.constant 0 : i32
    %c0_i32_1 = arith.constant 0 : i32
    %c0_i32_2 = arith.constant 0 : i32
    return %c0_i32, %c0_i32_0, %c0_i32_1 : i32, i32, i32
  }
  func.func @transform_5(%arg0: i32) -> (i32, i32, i32) {
    %c0_i32 = arith.constant 0 : i32
    %c0_i32_0 = arith.constant 0 : i32
    %c0_i32_1 = arith.constant 0 : i32
    %c0_i32_2 = arith.constant 0 : i32
    return %c0_i32, %c0_i32_0, %c0_i32_1 : i32, i32, i32
  }
  func.func @transform_6(%arg0: i32) -> (i32, i32, i32) {
    %c0_i32 = arith.constant 0 : i32
    %c0_i32_0 = arith.constant 0 : i32
    %c0_i32_1 = arith.constant 0 : i32
    %c0_i32_2 = arith.constant 0 : i32
    return %c0_i32, %c0_i32_0, %c0_i32_1 : i32, i32, i32
  }
  func.func @transform_7(%arg0: i32) -> (i32, i32, i32) {
    %c0_i32 = arith.constant 0 : i32
    %c0_i32_0 = arith.constant 0 : i32
    %c0_i32_1 = arith.constant 0 : i32
    %c0_i32_2 = arith.constant 0 : i32
    return %c0_i32, %c0_i32_0, %c0_i32_1 : i32, i32, i32
  }
  func.func @transform_8(%arg0: i32) -> (i32, i32, i32) {
    %c0_i32 = arith.constant 0 : i32
    %c0_i32_0 = arith.constant 0 : i32
    %c0_i32_1 = arith.constant 0 : i32
    %c0_i32_2 = arith.constant 0 : i32
    return %c0_i32, %c0_i32_0, %c0_i32_1 : i32, i32, i32
  }
  func.func @transform_9(%arg0: i32) -> (i32, i32, i32) {
    %c0_i32 = arith.constant 0 : i32
    %c0_i32_0 = arith.constant 0 : i32
    %c0_i32_1 = arith.constant 0 : i32
    %c0_i32_2 = arith.constant 0 : i32
    return %c0_i32, %c0_i32_0, %c0_i32_1 : i32, i32, i32
  }
  func.func @transform_10(%arg0: i32) -> (i32, i32, i32) {
    %c0_i32 = arith.constant 0 : i32
    %c0_i32_0 = arith.constant 0 : i32
    %c0_i32_1 = arith.constant 0 : i32
    %c0_i32_2 = arith.constant 0 : i32
    return %c0_i32, %c0_i32_0, %c0_i32_1 : i32, i32, i32
  }
  func.func @transform_11(%arg0: i32) -> (i32, i32, i32) {
    %c0_i32 = arith.constant 0 : i32
    %c0_i32_0 = arith.constant 0 : i32
    %c0_i32_1 = arith.constant 0 : i32
    %c0_i32_2 = arith.constant 0 : i32
    return %c0_i32, %c0_i32_0, %c0_i32_1 : i32, i32, i32
  }
  func.func @transform_12(%arg0: i32) -> (i32, i32, i32) {
    %c0_i32 = arith.constant 0 : i32
    %c0_i32_0 = arith.constant 0 : i32
    %c0_i32_1 = arith.constant 0 : i32
    %c0_i32_2 = arith.constant 0 : i32
    return %c0_i32, %c0_i32_0, %c0_i32_1 : i32, i32, i32
  }
  func.func @transform_13(%arg0: i32) -> (i32, i32, i32) {
    %c0_i32 = arith.constant 0 : i32
    %c0_i32_0 = arith.constant 0 : i32
    %c0_i32_1 = arith.constant 0 : i32
    return %arg0, %c0_i32, %c0_i32_0 : i32, i32, i32
  }
}

</mosaic_0001>

<bundles_post_ra>
// kernel: transformer_forward.1
= control target key start
LH: loop header
LB: loop body
LE: loop exit
PB: predicated region body
PF: predicated region fallthrough
CT: control target
= control target key end

     0   :  { %18 = vsyncpa [#allocation3], 0  ;;  %s6400_s0 = inlined_call_operand.hbm [shape: f32[2,8,128], index: 0, kind: input, shape index: {}]   ;;  %s6401_s1 = inlined_call_operand.hbm [shape: bf16[2,128,384], index: 1, kind: input, shape index: {}]   ;;  %s6402_s2 = inlined_call_operand.vmem [shape: f32[2,1,384], index: 2, kind: input, shape index: {}]   ;;  %s6403_s3 = inlined_call_operand.hbm [shape: bf16[2,128,128], index: 3, kind: input, shape index: {}]   ;;  %s6404_s4 = inlined_call_operand.hbm [shape: f32[2,1,128], index: 4, kind: input, shape index: {}]   ;;  %s6405_s5 = inlined_call_operand.vmem [shape: f32[2,1,128], index: 5, kind: input, shape index: {}]   ;;  %s6406_s6 = inlined_call_operand.hbm [shape: f32[2,1,128], index: 6, kind: input, shape index: {}]   ;;  %s6407_s7 = inlined_call_operand.hbm [shape: bf16[2,128,256], index: 7, kind: input, shape index: {}]   ;;  %s6408_s8 = inlined_call_operand.hbm [shape: f32[2,1,256], index: 8, kind: input, shape index: {}]   ;;  %s6409_s9 = inlined_call_operand.hbm [shape: bf16[2,256,128], index: 9, kind: input, shape index: {}]   ;;  %s6410_s10 = inlined_call_operand.hbm [shape: f32[2,1,128], index: 10, kind: input, shape index: {}]   ;;  %s6411_s11 = inlined_call_operand.vmem [shape: f32[2,1,128], index: 11, kind: input, shape index: {}]   ;;  %s6412_s12 = inlined_call_operand.vmem [shape: f32[2,1,128], index: 12, kind: input, shape index: {}]   ;;  %s6413_s13 = inlined_call_operand.vmem [shape: f32[2,8,128], index: 13, kind: output, shape index: {}]  }
   0x1   :  { %19 = vsyncpa [#allocation5], 0 }
   0x2   :  { %20 = vsyncpa [#allocation8], 0 }
   0x3   :  { %21 = vsyncpa [#allocation11], 0 }
   0x4   :  { %22 = vsyncpa [#allocation14], 0  ;;  %s5784_s25 = smov [#allocation4]  }
   0x5   :  { %s40_s26 = sshll.u32 %s5784_s25, 4  ;;  %s41_s26 = int_to_ptr.vmem [resolvable:$true] %s40_s26 }
   0x6   :  { %s5602_s27 = scalar_lea.vmem %s41_s26, 6144  ;;  %p5607_p1 = scmp.lt.s32.totalorder %s41_s26, %s41_s26 }
   0x7   :  { %p5603_p0 = scmp.ne.s32.totalorder %s41_s26, %s5602_s27  ;;  %p5608_p2 = scmp.lt.s32.totalorder %s5602_s27, %s5602_s27 }
   0x9   :  { %p5609_p3 = por %p5608_p2, %p5607_p1 }
   0xb   :  { %p5610_p4 = pnand %p5609_p3, %p5603_p0 }
   0xd   :  { %5613 = shalt.err (!%p5610_p4)
}
   0xe   :  { %s5785_s28 = smov 192   ;;  %s5786_s29 = smov 12  }
   0xf   :  { %46 = dma.hbm_to_vmem [thread:$0]  %s6401_s1, 6144, %s41_s26, [#allocation5], %s5785_s28, %s5785_s28, %s5786_s29  }
  0x10   :  { %s5787_s15 = smov [#allocation7]  }
  0x11   :  { %s66_s16 = sshll.u32 %s5787_s15, 4  ;;  %s67_s16 = int_to_ptr.vmem [resolvable:$true] %s66_s16 }
  0x12   :  { %s5622_s17 = scalar_lea.vmem %s67_s16, 32  ;;  %p5627_p6 = scmp.lt.s32.totalorder %s67_s16, %s67_s16 }
  0x13   :  { %p5623_p5 = scmp.ne.s32.totalorder %s67_s16, %s5622_s17  ;;  %p5628_p7 = scmp.lt.s32.totalorder %s5622_s17, %s5622_s17 }
  0x15   :  { %p5629_p8 = por %p5628_p7, %p5627_p6 }
  0x17   :  { %p5630_p9 = pnand %p5629_p8, %p5623_p5 }
  0x19   :  { %5633 = shalt.err (!%p5630_p9)
}
  0x1a   :  { %s5788_s18 = smov 16   ;;  %s5789_s19 = smov 1  }
  0x1b   :  { %72 = dma.hbm_to_vmem [thread:$0]  %s6404_s4, 32, %s67_s16, [#allocation8], %s5788_s18, %s5788_s18, %s5789_s19  }
  0x1c   :  { %s5790_s1 = smov [#allocation10]  }
  0x1d   :  { %s92_s22 = sshll.u32 %s5790_s1, 4  ;;  %s93_s22 = int_to_ptr.vmem [resolvable:$true] %s92_s22 }
  0x1e   :  { %s5642_s23 = scalar_lea.vmem %s93_s22, 4096  ;;  %p5647_p11 = scmp.lt.s32.totalorder %s93_s22, %s93_s22 }
  0x1f   :  { %p5643_p10 = scmp.ne.s32.totalorder %s93_s22, %s5642_s23  ;;  %p5648_p12 = scmp.lt.s32.totalorder %s5642_s23, %s5642_s23 }
  0x21   :  { %p5649_p13 = por %p5648_p12, %p5647_p11 }
  0x23   :  { %p5650_p0 = pnand %p5649_p13, %p5643_p10 }
  0x25   :  { %5653 = shalt.err (!%p5650_p0)
}
  0x26   :  { %s5791_s24 = smov 128   ;;  %s5792_s25 = smov 8  }
  0x27   :  { %98 = dma.hbm_to_vmem [thread:$0]  %s6407_s7, 4096, %s93_s22, [#allocation11], %s5791_s24, %s5791_s24, %s5792_s25  }
  0x28   :  { %s5793_s28 = smov [#allocation13]   ;;  %s5794_s4 = smov [#allocation2]  }
  0x29   :  { %s116_s29 = sshll.u32 %s5793_s28, 4  ;;  %s28_s30 = sshll.u32 %s5794_s4, 4  ;;  %s117_s29 = int_to_ptr.vmem [resolvable:$true] %s116_s29  ;;  %s29_s30 = int_to_ptr.vmem [resolvable:$true] %s28_s30 }
  0x2a   :  { %s5662_s14 = scalar_lea.vmem %s117_s29, 4096  ;;  %p5667_p2 = scmp.lt.s32.totalorder %s117_s29, %s117_s29 }
  0x2b   :  { %p5663_p1 = scmp.ne.s32.totalorder %s117_s29, %s5662_s14  ;;  %p5668_p3 = scmp.lt.s32.totalorder %s5662_s14, %s5662_s14 }
  0x2d   :  { %p5669_p4 = por %p5668_p3, %p5667_p2 }
  0x2f   :  { %p5670_p5 = pnand %p5669_p4, %p5663_p1 }
  0x31   :  { %5673 = shalt.err (!%p5670_p5)
}
  0x32   :  { %s5795_s15 = smov 64   ;;  %s5796_s16 = smov 4  }
  0x33   :  { %122 = dma.hbm_to_vmem [thread:$0]  %s6409_s9, 4096, %s117_s29, [#allocation14], %s5795_s15, %s5795_s15, %s5796_s16  }
  0x34   :  { %s5682_s7 = scalar_lea.vmem %s29_s30, 256  ;;  %p5687_p7 = scmp.lt.s32.totalorder %s29_s30, %s29_s30 }
  0x35   :  { %p5683_p6 = scmp.ne.s32.totalorder %s29_s30, %s5682_s7  ;;  %p5688_p8 = scmp.lt.s32.totalorder %s5682_s7, %s5682_s7 }
  0x37   :  { %p5689_p9 = por %p5688_p8, %p5687_p7 }
  0x39   :  { %p5690_p10 = pnand %p5689_p9, %p5683_p6 }
  0x3b   :  { %5693 = shalt.err (!%p5690_p10)
}
  0x3c   :  { %34 = dma.hbm_to_vmem [thread:$0]  %s6400_s0, 256, %s29_s30, [#allocation3], %s5791_s24, %s5791_s24, %s5792_s25  }
  0x3d   :  { %s5797_s22 = smov [#allocation6]   ;;  %s5798_s26 = smov [#allocation9]  }
  0x3e   :  { %s54_s23 = sshll.u32 %s5797_s22, 4  ;;  %s80_s27 = sshll.u32 %s5798_s26, 4  ;;  %s55_s23 = int_to_ptr.vmem [resolvable:$true] %s54_s23  ;;  %s81_s27 = int_to_ptr.vmem [resolvable:$true] %s80_s27 }
  0x3f   :  { %s5702_s28 = scalar_lea.vmem %s55_s23, 2048  ;;  %p5707_p12 = scmp.lt.s32.totalorder %s55_s23, %s55_s23 }
  0x40   :  { %p5703_p11 = scmp.ne.s32.totalorder %s55_s23, %s5702_s28  ;;  %p5708_p13 = scmp.lt.s32.totalorder %s5702_s28, %s5702_s28 }
  0x42   :  { %p5709_p0 = por %p5708_p13, %p5707_p12 }
  0x44   :  { %p5710_p1 = pnand %p5709_p0, %p5703_p11 }
  0x46   :  { %5713 = shalt.err (!%p5710_p1)
}
  0x47   :  { %60 = dma.hbm_to_vmem [thread:$0]  %s6403_s3, 2048, %s55_s23, [#allocation5], %s5795_s15, %s5795_s15, %s5796_s16  }
  0x48   :  { %s5722_s0 = scalar_lea.vmem %s81_s27, 32  ;;  %p5727_p3 = scmp.lt.s32.totalorder %s81_s27, %s81_s27 }
  0x49   :  { %p5723_p2 = scmp.ne.s32.totalorder %s81_s27, %s5722_s0  ;;  %p5728_p4 = scmp.lt.s32.totalorder %s5722_s0, %s5722_s0 }
  0x4b   :  { %p5729_p5 = por %p5728_p4, %p5727_p3 }
  0x4d   :  { %p5730_p6 = pnand %p5729_p5, %p5723_p2 }
  0x4f   :  { %5733 = shalt.err (!%p5730_p6)
}
  0x50   :  { %86 = dma.hbm_to_vmem [thread:$0]  %s6406_s6, 32, %s81_s27, [#allocation8], %s5788_s18, %s5788_s18, %s5789_s19  }
  0x51   :  { %s5799_s4 = smov [#allocation12]  }
  0x52   :  { %s104_s30 = sshll.u32 %s5799_s4, 4  ;;  %s105_s30 = int_to_ptr.vmem [resolvable:$true] %s104_s30 }
  0x53   :  { %s5742_s14 = scalar_lea.vmem %s105_s30, 64  ;;  %p5747_p8 = scmp.lt.s32.totalorder %s105_s30, %s105_s30 }
  0x54   :  { %p5743_p7 = scmp.ne.s32.totalorder %s105_s30, %s5742_s14  ;;  %p5748_p9 = scmp.lt.s32.totalorder %s5742_s14, %s5742_s14 }
  0x56   :  { %p5749_p10 = por %p5748_p9, %p5747_p8 }
  0x58   :  { %p5750_p11 = pnand %p5749_p10, %p5743_p7 }
  0x5a   :  { %5753 = shalt.err (!%p5750_p11)
}
  0x5b   :  { %s5800_s3 = smov 32   ;;  %s5801_s16 = smov 2  }
  0x5c   :  { %110 = dma.hbm_to_vmem [thread:$0]  %s6408_s8, 64, %s105_s30, [#allocation11], %s5800_s3, %s5800_s3, %s5801_s16  }
  0x5d   :  { %s5802_s7 = smov [#allocation15]  }
  0x5e   :  { %s128_s6 = sshll.u32 %s5802_s7, 4  ;;  %s129_s6 = int_to_ptr.vmem [resolvable:$true] %s128_s6 }
  0x5f   :  { %s5762_s21 = scalar_lea.vmem %s129_s6, 32  ;;  %p5767_p13 = scmp.lt.s32.totalorder %s129_s6, %s129_s6 }
  0x60   :  { %p5763_p12 = scmp.ne.s32.totalorder %s129_s6, %s5762_s21  ;;  %p5768_p0 = scmp.lt.s32.totalorder %s5762_s21, %s5762_s21 }
  0x62   :  { %p5769_p1 = por %p5768_p0, %p5767_p13 }
  0x64   :  { %p5770_p2 = pnand %p5769_p1, %p5763_p12 }
  0x66   :  { %5773 = shalt.err (!%p5770_p2)
}
  0x67   :  { %134 = dma.hbm_to_vmem [thread:$0]  %s6410_s10, 32, %s129_s6, [#allocation14], %s5788_s18, %s5788_s18, %s5789_s19  }
  0x68   :  { %5774 = dma.done.wait [#allocation3], 256  }
  0x69   :  { %5775 = vsyncadd [#allocation3], 4294967040 }
  0x6a   :  { %5776 = dma.done.wait [#allocation5], 8192  }
  0x6b   :  { %5777 = vsyncadd [#allocation5], 4294959104 }
  0x6c   :  { %5778 = dma.done.wait [#allocation8], 64  }
  0x6d   :  { %5779 = vsyncadd [#allocation8], 4294967232 }
  0x6e   :  { %5780 = dma.done.wait [#allocation11], 4160  }
  0x6f   :  { %5781 = vsyncadd [#allocation11], 4294963136 }
  0x70   :  { %5782 = dma.done.wait [#allocation14], 4128  }
  0x71   :  { %5783 = vsyncadd [#allocation14], 4294963168  ;;  %v5803_v0 = vmov 0   ;;  %v5804_v1 = vmov 0.0   ;;  %vm5805_vm0 = vmmov 0   ;;  %v5926_v23 = vld [vmem:[#allocation2] sm:$0xff]  ;;  %v204_v29 = vlaneseq }
  0x72   :  { %379 = vmatprep.mubr.bf16.mxu0 %v5803_v0  ;;  %5067 = vmatprep.subr.bf16.mxu1 %v5804_v1  ;;  %v5354_v2 = vld [vmem:[#allocation4 + $0xac] ss:$12 sps:$4 sm:$0xff]   ;;  %v5356_v3 = vld [vmem:[#allocation4 + $0xa8] ss:$12 sps:$4 sm:$0xff]   ;;  %v5359_v5 = vld [vmem:[#allocation4 + $0x90] ss:$12 sps:$4 sm:$0xff]  }
  0x73   :  { %5083 = vmatprep.mubr.msk.bf16.mxu1 %vm5805_vm0, %v5804_v1  ;;  %347 = vmatprep.subr.bf16.mxu0 %v5354_v2  ;;  %v5357_v4 = vld [vmem:[#allocation4 + $0x94] ss:$12 sps:$4 sm:$0xff]   ;;  %v5360_v6 = vld [vmem:[#allocation4 + $0x7c] ss:$12 sps:$4 sm:$0xff]   ;;  %v5362_v7 = vld [vmem:[#allocation4 + $0x78] ss:$12 sps:$4 sm:$0xff]  }
  0x74   :  { %348 = vmatpush1.bf16.msra.mxu0 %v5356_v3  ;;  %v5363_v8 = vld [vmem:[#allocation4 + $0x64] ss:$12 sps:$4 sm:$0xff]   ;;  %v5365_v9 = vld [vmem:[#allocation4 + $0x60] ss:$12 sps:$4 sm:$0xff]   ;;  %v5368_v13 = vld [vmem:[#allocation4 + $0x48] ss:$12 sps:$4 sm:$0xff]  }
  0x75   :  { %349 = vmatprep.subr.bf16.mxu0 %v5357_v4  ;;  %v5366_v10 = vld [vmem:[#allocation4 + $0x4c] ss:$12 sps:$4 sm:$0xff]   ;;  %v5378_v11 = vld [vmem:[#allocation4 + $0xb0] ss:$12 sps:$4 sm:$0xff]   ;;  %v5369_v14 = vld [vmem:[#allocation4 + $0x34] ss:$12 sps:$4 sm:$0xff]  }
  0x76   :  { %5068 = vmatpush3.bf16.msra.mxu1 %v5378_v11  ;;  %v5379_v12 = vld [vmem:[#allocation4 + $0x98] ss:$12 sps:$4 sm:$0xff]   ;;  %v5380_v15 = vld [vmem:[#allocation4 + $0x80] ss:$12 sps:$4 sm:$0xff]   ;;  %v5371_v16 = vld [vmem:[#allocation4 + $0x30] ss:$12 sps:$4 sm:$0xff]  }
  0x77   :  { %5069 = vmatprep.subr.bf16.mxu1 %v5804_v1  ;;  %v5372_v17 = vld [vmem:[#allocation4 + $0x1c] ss:$12 sps:$4 sm:$0xff]   ;;  %v5374_v19 = vld [vmem:[#allocation4 + $0x18] ss:$12 sps:$4 sm:$0xff]   ;;  %v5377_v22 = vld [vmem:[#allocation4] ss:$12 sps:$4 sm:$0xff]  }
  0x78   :  { %350 = vmatpush1.bf16.msra.mxu0 %v5359_v5  ;;  %v5381_v18 = vld [vmem:[#allocation4 + $0x68] ss:$12 sps:$4 sm:$0xff]   ;;  %v5375_v20 = vld [vmem:[#allocation4 + $0x4] ss:$12 sps:$4 sm:$0xff]   ;;  %v5928_v24 = vld [vmem:[#allocation2 + $0x8] sm:$0xff]  ;;  %v5942_v30 = vshrl.u32 %v204_v29, 7 }
  0x79   :  { %351 = vmatprep.subr.bf16.mxu0 %v5360_v6  ;;  %v5382_v21 = vld [vmem:[#allocation4 + $0x50] ss:$12 sps:$4 sm:$0xff]   ;;  %v5383_v25 = vld [vmem:[#allocation4 + $0x38] ss:$12 sps:$4 sm:$0xff]   ;;  %v169_v26 = vpack.c.bf16 %v5928_v24, %v5926_v23  ;;  %v5384_v27 = vld [vmem:[#allocation4 + $0x20] ss:$12 sps:$4 sm:$0xff]  }
  0x7a   :  { %5070 = vmatpush3.bf16.msra.mxu1 %v5379_v12  ;;  %v5385_v28 = vld [vmem:[#allocation4 + $0x8] ss:$12 sps:$4 sm:$0xff]   ;;  %v5945_v31 = vsub.s32 1, %v5942_v30  ;;  %v202_v32 = vld [vmem:[%s6402_s2] sm:$0x7]  ;;  %v5951_v33 = vsub.s32 0, %v5942_v30 }
  0x7b   :  { %5071 = vmatprep.subr.bf16.mxu1 %v5804_v1  ;;  %vm447_vm1 = vcmask 261120   ;;  %v214_v40 = vsub.s32 2, %v5942_v30  ;;  %s5806_s18 = smov 96   ;;  %vm600_vm2 = vcmask 64512  }
  0x7c   :  { %352 = vmatpush1.bf16.msra.mxu0 %v5362_v7  ;;  %v211_v34 = vrot.slane %v202_v32, %v5945_v31  ;;  %v207_v36 = vrot.slane %v202_v32, %v5951_v33 }
  0x7d   :  { %353 = vmatprep.subr.bf16.mxu0 %v5363_v8  ;;  %v215_v44 = vrot.slane %v202_v32, %v214_v40 }
  0x7e   :  { %5072 = vmatpush3.bf16.msra.mxu1 %v5380_v15 }
  0x7f   :  { %5073 = vmatprep.subr.bf16.mxu1 %v5804_v1 }
  0x80   :  { %354 = vmatpush1.bf16.msra.mxu0 %v5365_v9 }
  0x81   :  { %355 = vmatprep.subr.bf16.mxu0 %v5366_v10 }
  0x82   :  { %5074 = vmatpush3.bf16.msra.mxu1 %v5381_v18 }
  0x83   :  { %5075 = vmatprep.subr.bf16.mxu1 %v5804_v1 }
  0x84   :  { %356 = vmatpush1.bf16.msra.mxu0 %v5368_v13 }
  0x85   :  { %357 = vmatprep.subr.bf16.mxu0 %v5369_v14 }
  0x86   :  { %5076 = vmatpush3.bf16.msra.mxu1 %v5382_v21 }
  0x87   :  { %5077 = vmatprep.subr.bf16.mxu1 %v5804_v1 }
  0x88   :  { %358 = vmatpush1.bf16.msra.mxu0 %v5371_v16 }
  0x89   :  { %359 = vmatprep.subr.bf16.mxu0 %v5372_v17 }
  0x8a   :  { %5078 = vmatpush3.bf16.msra.mxu1 %v5383_v25 }
  0x8b   :  { %5079 = vmatprep.subr.bf16.mxu1 %v5804_v1 }
  0x8c   :  { %360 = vmatpush1.bf16.msra.mxu0 %v5374_v19 }
  0x8d   :  { %361 = vmatprep.subr.bf16.mxu0 %v5375_v20 }
  0x8e   :  { %5080 = vmatpush3.bf16.msra.mxu1 %v5384_v27 }
  0x8f   :  { %5081 = vmatprep.subr.bf16.mxu1 %v5804_v1 }
  0x90   :  { %362 = vmatpush1.bf16.msra.mxu0 %v5377_v22 }
  0x91   :  { %5097 = vmatprep.subr.mxu0 %v5804_v1 }
  0x92   :  { %5082 = vmatpush3.bf16.msra.mxu1 %v5385_v28 }
  0x93   :  { %380 = vmatmul.mubr.bf16.vlgmr.msra.gmra.mxu0 %v169_v26  ;;  %5087 = vmatprep.subr.mxu1 %v5804_v1 }
  0x94   :  { %5099 = vmatprep.mubr.msk.f32.mxu0 %vm5805_vm0, %v5804_v1 }
  0x95   :  { %5084 = vmatmul.mubr.bf16.vlgmr.msra.gmra.mxu1 %v169_v26 }
  0x96   :  { %5089 = vmatprep.mubr.msk.f32.mxu1 %vm5805_vm0, %v5804_v1 }
 0x153   :  { %v381_v35 = vpop.f32.mrf.mxu0 }
 0x154   :  { %v5960_v41 = vadd.f32 %v381_v35, %v207_v36 }
 0x155   :  { %v383_v37 = vpop.f32.mrf.mxu0  ;;  %v424_v46 = vpop.f32.mrf.mxu1 }
 0x156   :  { %v5955_v38 = vadd.f32 %v383_v37, %v211_v34  ;;  %v5980_v47 = vadd.f32 %v424_v46, %v215_v44 }
 0x157   :  { %v385_v39 = vpop.f32.mrf.mxu0  ;;  %v5085_v48 = vpop.f32.mrf.mxu1 }
 0x158   :  { %5088 = vmatpush3.xpose.msk.msra.mxu1 %vm447_vm1, %v5955_v38  ;;  %v5973_v45 = vadd.f32 %v385_v39, %v207_v36  ;;  %5098 = vmatpush3.msra.mxu0 %v5980_v47 }
 0x159   :  { %v387_v42 = vpop.f32.mrf.mxu0  ;;  %5092 = vmatprep.subr.mxu1 %v5804_v1  ;;  %v427_v49 = vpop.f32.mrf.mxu1  ;;  %5107 = vmatprep.subr.mxu0 %v5804_v1 }
 0x15a   :  { %v5963_v43 = vadd.f32 %v387_v42, %v211_v34  ;;  %v5988_v50 = vadd.f32 %v427_v49, %v215_v44 }
 0x15b   :  { %5090 = vmatmul.mubr.msk.f32.vlgmr.msra.gmra.mxu1 %vm447_vm1, %v5960_v41  ;;  %v5086_v51 = vpop.f32.mrf.mxu1 }
 0x15c   :  { %850 = vrot.lane.b32.xlu1 %v5963_v43, %s5806_s18  ;;  %5093 = vmatpush3.xpose.msk.msra.mxu1 %vm447_vm1, %v5963_v43 }
 0x15d   :  { %5094 = vmatprep.mubr.msk.f32.mxu1 %vm5805_vm0, %v5804_v1  ;;  %5102 = vmatprep.subr.mxu1 %v5804_v1 }
 0x15f   :  { %5095 = vmatmul.mubr.msk.f32.vlgmr.msra.gmra.mxu1 %vm447_vm1, %v5973_v45 }
 0x160   :  { %770 = vrot.lane.b32.xlu1 %v5960_v41, %s5806_s18  ;;  %5104 = vmatprep.mubr.msk.f32.mxu1 %vm5805_vm0, %v5804_v1 }
 0x161   :  { %5103 = vmatpush3.msra.mxu1 %v5988_v50 }
 0x162   :  { %5112 = vmatprep.subr.mxu1 %v5804_v1 }
 0x1ce   :  { %v851_v6 = vpop.permute.xlu1 %850 }
 0x1d2   :  { %v771_v7 = vpop.permute.xlu1 %770 }
 0x21b   :  { %v520_v52 = vpop.f32.mrf.mxu1 }
 0x21c   :  { %v601_v53 = vsel %vm600_vm2, %v520_v52, -inf }
 0x21d   :  { %602 = vmax.xlane.f32.xlu0 %v601_v53  ;;  %v5091_v54 = vpop.f32.mrf.mxu1 }
 0x21e   :  { %v5388_v54 = vld [vmem:[#allocation6 + $0x18] sm:$0xff]  }
 0x21f   :  { %v596_v55 = vpop.f32.mrf.mxu1 }
 0x220   :  { %v604_v56 = vsel %vm600_vm2, %v596_v55, -inf }
 0x221   :  { %605 = vmax.xlane.f32.xlu0 %v604_v56  ;;  %v5096_v57 = vpop.f32.mrf.mxu1 }
 0x222   :  { %v5386_v57 = vld [vmem:[#allocation6 + $0x8] sm:$0xff]  }
 0x237   :  { %772 = vrot.lane.b32.xlu0 %v5955_v38, %s5806_s18 }
 0x2a6   :  { %v603_v58 = vpop.xlane.xlu0 %602 }
 0x2a7   :  { %v607_v59 = vsub.f32 %v520_v52, %v603_v58  ;;  %v5387_v58 = vld [vmem:[#allocation6] sm:$0xff]  }
 0x2a9   :  { %v609_v60 = vmul.f32 1.442695, %v607_v59 }
 0x2aa   :  { %v606_v61 = vpop.xlane.xlu0 %605 }
 0x2ab   :  { %5514 = vpow2.f32 %v609_v60  ;;  %v608_v62 = vsub.f32 %v596_v55, %v606_v61  ;;  %v5389_v61 = vld [vmem:[#allocation6 + $0x10] sm:$0xff]  }
 0x2ad   :  { %v611_v63 = vmul.f32 1.442695, %v608_v62 }
 0x2ae   :  { %v773_v12 = vpop.permute.xlu0 %772 }
 0x2af   :  { %5516 = vpow2.f32 %v611_v63 }
 0x2b8   :  { %v5515_v2 = vpop.eup %5514 }
 0x2b9   :  { %v613_v3 = vsel %vm600_vm2, %v5515_v2, 0.0 }
 0x2ba   :  { %614 = vadd.xlane.f32.xlu1 %v613_v3 }
 0x2bc   :  { %v5517_v4 = vpop.eup %5516 }
 0x2bd   :  { %v616_v5 = vsel %vm600_vm2, %v5517_v4, 0.0 }
 0x2be   :  { %617 = vadd.xlane.f32.xlu1 %v616_v5 }
 0x2cf   :  { %848 = vrot.lane.b32.xlu1 %v5973_v45, %s5806_s18 }
 0x343   :  { %v615_v8 = vpop.xlane.xlu1 %614 }
 0x344   :  { %5518 = vrcp.f32 %v615_v8 }
 0x347   :  { %v618_v9 = vpop.xlane.xlu1 %617 }
 0x348   :  { %5520 = vrcp.f32 %v618_v9 }
 0x34b   :  { %v849_v15 = vpop.permute.xlu1 %848 }
 0x351   :  { %v5519_v10 = vpop.eup %5518 }
 0x352   :  { %v621_v11 = vmul.f32 %v5519_v10, %v5515_v2 }
 0x354   :  { %5100 = vmatmul.mubr.msk.f32.vlgmr.msra.gmra.mxu0 %vm600_vm2, %v621_v11 }
 0x355   :  { %v5521_v13 = vpop.eup %5520  ;;  %5108 = vmatpush3.xpose.msk.msra.mxu0 %vm447_vm1, %v773_v12  ;;  %5109 = vmatprep.mubr.msk.f32.mxu0 %vm5805_vm0, %v5804_v1 }
 0x356   :  { %v622_v14 = vmul.f32 %v5521_v13, %v5517_v4  ;;  %5117 = vmatprep.subr.mxu0 %v5804_v1 }
 0x358   :  { %5105 = vmatmul.mubr.msk.f32.vlgmr.msra.gmra.mxu1 %vm600_vm2, %v622_v14  ;;  %5110 = vmatmul.mubr.msk.f32.vlgmr.msra.gmra.mxu0 %vm447_vm1, %v771_v7 }
 0x359   :  { %5113 = vmatpush3.xpose.msk.msra.mxu1 %vm447_vm1, %v851_v6  ;;  %5114 = vmatprep.mubr.msk.f32.mxu1 %vm5805_vm0, %v5804_v1 }
 0x35a   :  { %5122 = vmatprep.subr.mxu1 %v5804_v1  ;;  %5119 = vmatprep.mubr.msk.f32.mxu0 %vm5805_vm0, %v5804_v1 }
 0x35c   :  { %5115 = vmatmul.mubr.msk.f32.vlgmr.msra.gmra.mxu1 %vm447_vm1, %v849_v15 }
 0x35d   :  { %5124 = vmatprep.mubr.msk.f32.mxu1 %vm5805_vm0, %v5804_v1 }
 0x414   :  { %v6016_v16 = vpop.f32.mrf.mxu0 }
 0x416   :  { %v5101_v17 = vpop.f32.mrf.mxu0 }
 0x418   :  { %v765_v18 = vpop.f32.mrf.mxu1  ;;  %v844_v19 = vpop.f32.mrf.mxu0 }
 0x419   :  { %v769_v20 = vpack.c.bf16 %v765_v18, %v6016_v16  ;;  %v926_v21 = vsel %vm600_vm2, %v844_v19, -inf }
 0x41a   :  { %927 = vmax.xlane.f32.xlu0 %v926_v21  ;;  %v5106_v22 = vpop.f32.mrf.mxu1  ;;  %v5111_v25 = vpop.f32.mrf.mxu0 }
 0x41c   :  { %v922_v26 = vpop.f32.mrf.mxu1 }
 0x41d   :  { %v929_v27 = vsel %vm600_vm2, %v922_v26, -inf }
 0x41e   :  { %930 = vmax.xlane.f32.xlu1 %v929_v27  ;;  %v5116_v28 = vpop.f32.mrf.mxu1 }
 0x42f   :  { %1026 = vrot.lane.b32.xlu1 %v5988_v50, %s5806_s18 }
 0x433   :  { %1295 = vrot.lane.b32.xlu1 %v5963_v43, %s5795_s15 }
 0x437   :  { %1293 = vrot.lane.b32.xlu1 %v5973_v45, %s5795_s15 }
 0x43b   :  { %1215 = vrot.lane.b32.xlu1 %v5960_v41, %s5795_s15 }
 0x43f   :  { %1606 = vrot.lane.b32.xlu1 %v5955_v38, %s5800_s3 }
 0x4a3   :  { %v928_v29 = vpop.xlane.xlu0 %927 }
 0x4a4   :  { %v932_v32 = vsub.f32 %v844_v19, %v928_v29 }
 0x4a6   :  { %v934_v34 = vmul.f32 1.442695, %v932_v32 }
 0x4a7   :  { %v931_v35 = vpop.xlane.xlu1 %930 }
 0x4a8   :  { %5522 = vpow2.f32 %v934_v34  ;;  %v933_v36 = vsub.f32 %v922_v26, %v931_v35 }
 0x4aa   :  { %v936_v37 = vmul.f32 1.442695, %v933_v36 }
 0x4ab   :  { %v1027_v39 = vpop.permute.xlu1 %1026 }
 0x4ac   :  { %5524 = vpow2.f32 %v936_v37  ;;  %5123 = vmatpush3.msra.mxu1 %v1027_v39 }
 0x4ad   :  { %5135 = vmatprep.subr.bf16.mxu1 %v5804_v1 }
 0x4af   :  { %v1296_v59 = vpop.permute.xlu1 %1295 }
 0x4b3   :  { %v1294_v60 = vpop.permute.xlu1 %1293 }
 0x4b5   :  { %v5523_v42 = vpop.eup %5522 }
 0x4b6   :  { %v938_v44 = vsel %vm600_vm2, %v5523_v42, 0.0 }
 0x4b7   :  { %939 = vadd.xlane.f32.xlu0 %v938_v44  ;;  %v1216_v7 = vpop.permute.xlu1 %1215 }
 0x4b9   :  { %v5525_v46 = vpop.eup %5524 }
 0x4ba   :  { %v941_v48 = vsel %vm600_vm2, %v5525_v46, 0.0 }
 0x4bb   :  { %942 = vadd.xlane.f32.xlu0 %v941_v48  ;;  %v1607_v27 = vpop.permute.xlu1 %1606 }
 0x4d1   :  { %949 = vrot.lane.b32.xlu0 %v5980_v47, %s5806_s18 }
 0x4d5   :  { %1217 = vrot.lane.b32.xlu0 %v5955_v38, %s5795_s15 }
 0x540   :  { %v940_v49 = vpop.xlane.xlu0 %939 }
 0x541   :  { %5526 = vrcp.f32 %v940_v49 }
 0x544   :  { %v943_v51 = vpop.xlane.xlu0 %942 }
 0x545   :  { %5528 = vrcp.f32 %v943_v51 }
 0x548   :  { %v950_v52 = vpop.permute.xlu0 %949 }
 0x549   :  { %5118 = vmatpush3.msra.mxu0 %v950_v52 }
 0x54a   :  { %5127 = vmatprep.subr.bf16.mxu0 %v5804_v1 }
 0x54c   :  { %v1218_v5 = vpop.permute.xlu0 %1217 }
 0x54e   :  { %v5527_v53 = vpop.eup %5526 }
 0x54f   :  { %v946_v55 = vmul.f32 %v5527_v53, %v5523_v42 }
 0x551   :  { %5120 = vmatmul.mubr.msk.f32.vlgmr.msra.gmra.mxu0 %vm600_vm2, %v946_v55 }
 0x552   :  { %v5529_v56 = vpop.eup %5528  ;;  %5128 = vmatpush3.bf16.msra.mxu0 %v5388_v54  ;;  %5131 = vmatprep.mubr.msk.bf16.mxu0 %vm5805_vm0, %v5804_v1 }
 0x553   :  { %v947_v38 = vmul.f32 %v5529_v56, %v5525_v46  ;;  %5129 = vmatprep.subr.bf16.mxu0 %v5804_v1 }
 0x555   :  { %5125 = vmatmul.mubr.msk.f32.vlgmr.msra.gmra.mxu1 %vm600_vm2, %v947_v38 }
 0x556   :  { %5136 = vmatpush3.bf16.msra.mxu1 %v5386_v57  ;;  %5139 = vmatprep.mubr.msk.bf16.mxu1 %vm5805_vm0, %v5804_v1 }
 0x557   :  { %5137 = vmatprep.subr.bf16.mxu1 %v5804_v1  ;;  %5130 = vmatpush3.bf16.msra.mxu0 %v5389_v61 }
 0x558   :  { %5143 = vmatprep.subr.mxu0 %v5804_v1 }
 0x55a   :  { %5138 = vmatpush3.bf16.msra.mxu1 %v5387_v58  ;;  %v5390_v58 = vld [vmem:[#allocation6 + $0x28] sm:$0xff]  }
 0x55b   :  { %5148 = vmatprep.subr.mxu1 %v5804_v1 }
 0x55d   :  { %5140 = vmatmul.mubr.msk.bf16.vlgmr.msra.gmra.mxu1 %vm447_vm1, %v769_v20 }
 0x55e   :  { %5149 = vmatpush3.xpose.msk.msra.mxu1 %vm447_vm1, %v1296_v59  ;;  %5150 = vmatprep.mubr.msk.f32.mxu1 %vm5805_vm0, %v5804_v1  ;;  %v5391_v59 = vld [vmem:[#allocation6 + $0x20] sm:$0xff]  }
 0x55f   :  { %5158 = vmatprep.subr.mxu1 %v5804_v1 }
 0x565   :  { %5151 = vmatmul.mubr.msk.f32.vlgmr.msra.gmra.mxu1 %vm447_vm1, %v1294_v60 }
 0x566   :  { %5160 = vmatprep.mubr.msk.f32.mxu1 %vm5805_vm0, %v5804_v1 }
 0x611   :  { %v1021_v62 = vpop.f32.mrf.mxu0 }
 0x613   :  { %v5121_v63 = vpop.f32.mrf.mxu0 }
 0x615   :  { %v1098_v2 = vpop.f32.mrf.mxu1 }
 0x616   :  { %v1102_v3 = vpack.c.bf16 %v1098_v2, %v1021_v62 }
 0x617   :  { %v5126_v4 = vpop.f32.mrf.mxu1 }
 0x618   :  { %5132 = vmatmul.mubr.msk.bf16.vlgmr.msra.gmra.mxu0 %vm447_vm1, %v1102_v3 }
 0x619   :  { %5144 = vmatpush3.xpose.msk.msra.mxu0 %vm447_vm1, %v1218_v5  ;;  %5145 = vmatprep.mubr.msk.f32.mxu0 %vm5805_vm0, %v5804_v1 }
 0x61a   :  { %5153 = vmatprep.subr.mxu0 %v5804_v1 }
 0x61d   :  { %v6062_v6 = vpop.f32.mrf.mxu1 }
 0x61f   :  { %v5141_v8 = vpop.f32.mrf.mxu1 }
 0x620   :  { %5146 = vmatmul.mubr.msk.f32.vlgmr.msra.gmra.mxu0 %vm447_vm1, %v1216_v7 }
 0x621   :  { %v6065_v9 = vpop.f32.mrf.mxu1  ;;  %5155 = vmatprep.mubr.msk.f32.mxu0 %vm5805_vm0, %v5804_v1 }
 0x623   :  { %v5142_v10 = vpop.f32.mrf.mxu1 }
 0x625   :  { %v1367_v11 = vpop.f32.mrf.mxu1 }
 0x626   :  { %v1374_v12 = vsel %vm600_vm2, %v1367_v11, -inf }
 0x627   :  { %1375 = vmax.xlane.f32.xlu0 %v1374_v12  ;;  %v5152_v13 = vpop.f32.mrf.mxu1 }
 0x63d   :  { %1469 = vrot.lane.b32.xlu0 %v5988_v50, %s5795_s15 }
 0x641   :  { %1604 = vrot.lane.b32.xlu0 %v5960_v41, %s5800_s3 }
 0x645   :  { %1682 = vrot.lane.b32.xlu0 %v5973_v45, %s5800_s3 }
 0x6b0   :  { %v1376_v14 = vpop.xlane.xlu0 %1375 }
 0x6b1   :  { %v1378_v15 = vsub.f32 %v1367_v11, %v1376_v14 }
 0x6b3   :  { %v1381_v16 = vmul.f32 1.442695, %v1378_v15 }
 0x6b4   :  { %v1470_v17 = vpop.permute.xlu0 %1469 }
 0x6b5   :  { %5530 = vpow2.f32 %v1381_v16  ;;  %5159 = vmatpush3.msra.mxu1 %v1470_v17 }
 0x6b6   :  { %5171 = vmatprep.subr.mxu1 %v5804_v1 }
 0x6b8   :  { %v1605_v34 = vpop.permute.xlu0 %1604 }
 0x6bc   :  { %v1683_v35 = vpop.permute.xlu0 %1682 }
 0x6c2   :  { %v5531_v18 = vpop.eup %5530 }
 0x6c3   :  { %v1386_v19 = vsel %vm600_vm2, %v5531_v18, 0.0 }
 0x6c4   :  { %1387 = vadd.xlane.f32.xlu1 %v1386_v19 }
 0x6d5   :  { %1684 = vrot.lane.b32.xlu1 %v5963_v43, %s5800_s3 }
 0x6d8   :  { %v6080_v20 = vpop.f32.mrf.mxu0 }
 0x6da   :  { %v5133_v41 = vpop.f32.mrf.mxu0 }
 0x6db   :  { %v5392_v41 = vld [vmem:[#allocation6 + $0x38] sm:$0xff]  }
 0x6dc   :  { %v6082_v21 = vpop.f32.mrf.mxu0 }
 0x6de   :  { %v5134_v45 = vpop.f32.mrf.mxu0 }
 0x6df   :  { %v5393_v45 = vld [vmem:[#allocation6 + $0x30] sm:$0xff]  }
 0x6e0   :  { %v1289_v22 = vpop.f32.mrf.mxu0 }
 0x6e1   :  { %v1371_v26 = vsel %vm600_vm2, %v1289_v22, -inf }
 0x6e2   :  { %v5147_v25 = vpop.f32.mrf.mxu0 }
 0x6f9   :  { %1372 = vmax.xlane.f32.xlu1 %v1371_v26 }
 0x74d   :  { %v1388_v28 = vpop.xlane.xlu1 %1387 }
 0x74e   :  { %5532 = vrcp.f32 %v1388_v28  ;;  %v1212_v28 = vadd.f32 %v6065_v9, %v6082_v21 }
 0x751   :  { %v1685_v43 = vpop.permute.xlu1 %1684 }
 0x75b   :  { %v5533_v29 = vpop.eup %5532 }
 0x75c   :  { %v1392_v32 = vmul.f32 %v5533_v29, %v5531_v18 }
 0x75e   :  { %5161 = vmatmul.mubr.msk.f32.vlgmr.msra.gmra.mxu1 %vm600_vm2, %v1392_v32 }
 0x75f   :  { %5172 = vmatpush3.xpose.msk.msra.mxu1 %vm447_vm1, %v1607_v27  ;;  %5173 = vmatprep.mubr.msk.f32.mxu1 %vm5805_vm0, %v5804_v1 }
 0x760   :  { %5176 = vmatprep.subr.mxu1 %v5804_v1 }
 0x762   :  { %5174 = vmatmul.mubr.msk.f32.vlgmr.msra.gmra.mxu1 %vm447_vm1, %v1605_v34 }
 0x763   :  { %5177 = vmatpush3.xpose.msk.msra.mxu1 %vm447_vm1, %v1685_v43  ;;  %5178 = vmatprep.mubr.msk.f32.mxu1 %vm5805_vm0, %v5804_v1 }
 0x764   :  { %5181 = vmatprep.subr.mxu1 %v5804_v1 }
 0x766   :  { %5179 = vmatmul.mubr.msk.f32.vlgmr.msra.gmra.mxu1 %vm447_vm1, %v1683_v35 }
 0x767   :  { %5183 = vmatprep.mubr.msk.f32.mxu1 %vm5805_vm0, %v5804_v1 }
 0x782   :  { %v1373_v36 = vpop.xlane.xlu1 %1372 }
 0x783   :  { %v1377_v37 = vsub.f32 %v1289_v22, %v1373_v36  ;;  %v1209_v22 = vadd.f32 %v6062_v6, %v6080_v20 }
 0x785   :  { %v1379_v39 = vmul.f32 1.442695, %v1377_v37 }
 0x787   :  { %5534 = vpow2.f32 %v1379_v39 }
 0x794   :  { %v5535_v42 = vpop.eup %5534 }
 0x795   :  { %v1383_v44 = vsel %vm600_vm2, %v5535_v42, 0.0 }
 0x796   :  { %1384 = vadd.xlane.f32.xlu0 %v1383_v44  ;;  %v4777_v44 = vld [vmem:[#allocation7] ss:$0 sm:$0xff] }
 0x7ac   :  { %1393 = vrot.lane.b32.xlu0 %v5980_v47, %s5795_s15 }
 0x7b0   :  { %1858 = vrot.lane.b32.xlu0 %v5988_v50, %s5800_s3 }
 0x81e   :  { %v1541_v46 = vpop.f32.mrf.mxu1 }
 0x81f   :  { %v1385_v48 = vpop.xlane.xlu0 %1384 }
 0x820   :  { %5536 = vrcp.f32 %v1385_v48  ;;  %v5162_v49 = vpop.f32.mrf.mxu1 }
 0x822   :  { %v1678_v51 = vpop.f32.mrf.mxu1 }
 0x823   :  { %v1394_v52 = vpop.permute.xlu0 %1393  ;;  %v1760_v53 = vsel %vm600_vm2, %v1678_v51, -inf }
 0x824   :  { %5154 = vmatpush3.msra.mxu0 %v1394_v52  ;;  %1761 = vmax.xlane.f32.xlu1 %v1760_v53  ;;  %v5175_v54 = vpop.f32.mrf.mxu1 }
 0x825   :  { %5163 = vmatprep.subr.bf16.mxu0 %v5804_v1 }
 0x826   :  { %v1756_v55 = vpop.f32.mrf.mxu1 }
 0x827   :  { %v1763_v56 = vsel %vm600_vm2, %v1756_v55, -inf  ;;  %v1859_v13 = vpop.permute.xlu0 %1858 }
 0x828   :  { %1764 = vmax.xlane.f32.xlu1 %v1763_v56  ;;  %v5180_v57 = vpop.f32.mrf.mxu1  ;;  %v5399_v56 = vld [vmem:[#allocation10 + $0x64] ss:$8 sps:$4 sm:$0xff]  }
 0x829   :  { %v5397_v57 = vld [vmem:[#allocation10 + $0x60] ss:$8 sps:$4 sm:$0xff]  }
 0x82d   :  { %v5537_v38 = vpop.eup %5536 }
 0x82e   :  { %v1391_v50 = vmul.f32 %v5537_v38, %v5535_v42  ;;  %v5402_v38 = vld [vmem:[#allocation10 + $0x54] ss:$8 sps:$4 sm:$0xff]  }
 0x830   :  { %5156 = vmatmul.mubr.msk.f32.vlgmr.msra.gmra.mxu0 %vm600_vm2, %v1391_v50  ;;  %v5400_v50 = vld [vmem:[#allocation10 + $0x50] ss:$8 sps:$4 sm:$0xff]  }
 0x831   :  { %5167 = vmatprep.mubr.msk.bf16.mxu0 %vm5805_vm0, %v5804_v1  ;;  %5164 = vmatpush3.bf16.msra.mxu0 %v5390_v58  ;;  %v5405_v58 = vld [vmem:[#allocation10 + $0x44] ss:$8 sps:$4 sm:$0xff]  }
 0x832   :  { %5165 = vmatprep.subr.bf16.mxu0 %v5804_v1 }
 0x835   :  { %5166 = vmatpush3.bf16.msra.mxu0 %v5391_v59  ;;  %v5408_v59 = vld [vmem:[#allocation10 + $0x34] ss:$8 sps:$4 sm:$0xff]  }
 0x836   :  { %5186 = vmatprep.subr.mxu0 %v5804_v1 }
 0x8ad   :  { %v1762_v60 = vpop.xlane.xlu1 %1761 }
 0x8ae   :  { %v1766_v61 = vsub.f32 %v1678_v51, %v1762_v60  ;;  %v5406_v60 = vld [vmem:[#allocation10 + $0x30] ss:$8 sps:$4 sm:$0xff]  }
 0x8b0   :  { %v1768_v62 = vmul.f32 1.442695, %v1766_v61  ;;  %v5411_v61 = vld [vmem:[#allocation10 + $0x24] ss:$8 sps:$4 sm:$0xff]  }
 0x8b1   :  { %v1765_v63 = vpop.xlane.xlu1 %1764 }
 0x8b2   :  { %5538 = vpow2.f32 %v1768_v62  ;;  %v1767_v2 = vsub.f32 %v1756_v55, %v1765_v63  ;;  %v5396_v55 = vld [vmem:[#allocation10 + $0x74] ss:$8 sps:$4 sm:$0xff]   ;;  %v5409_v62 = vld [vmem:[#allocation10 + $0x20] ss:$8 sps:$4 sm:$0xff]  }
 0x8b3   :  { %v5414_v63 = vld [vmem:[#allocation10 + $0x14] ss:$8 sps:$4 sm:$0xff]  }
 0x8b4   :  { %v1770_v3 = vmul.f32 1.442695, %v1767_v2  ;;  %v5412_v2 = vld [vmem:[#allocation10 + $0x10] ss:$8 sps:$4 sm:$0xff]  }
 0x8b6   :  { %5540 = vpow2.f32 %v1770_v3  ;;  %v5417_v3 = vld [vmem:[#allocation10 + $0x4] ss:$8 sps:$4 sm:$0xff]  }
 0x8bf   :  { %v5539_v4 = vpop.eup %5538 }
 0x8c0   :  { %v1772_v5 = vsel %vm600_vm2, %v5539_v4, 0.0 }
 0x8c1   :  { %1773 = vadd.xlane.f32.xlu1 %v1772_v5  ;;  %v5418_v5 = vld [vmem:[#allocation13 + $0x78] sm:$0xff]  }
 0x8c3   :  { %v5541_v7 = vpop.eup %5540 }
 0x8c4   :  { %v1775_v8 = vsel %vm600_vm2, %v5541_v7, 0.0 }
 0x8c5   :  { %1776 = vadd.xlane.f32.xlu1 %v1775_v8  ;;  %v5420_v8 = vld [vmem:[#allocation13 + $0x70] sm:$0xff]  }
 0x8d6   :  { %1782 = vrot.lane.b32.xlu1 %v5980_v47, %s5800_s3 }
 0x8f0   :  { %v1465_v10 = vpop.f32.mrf.mxu0 }
 0x8f1   :  { %v1545_v11 = vpack.c.bf16 %v1541_v46, %v1465_v10  ;;  %v5421_v10 = vld [vmem:[#allocation13 + $0x30] sm:$0xff]  }
 0x8f2   :  { %v5157_v12 = vpop.f32.mrf.mxu0 }
 0x8f3   :  { %5168 = vmatmul.mubr.msk.bf16.vlgmr.msra.gmra.mxu0 %vm447_vm1, %v1545_v11  ;;  %v5422_v11 = vld [vmem:[#allocation13 + $0x68] sm:$0xff]  }
 0x8f4   :  { %5187 = vmatpush3.msra.mxu0 %v1859_v13  ;;  %5188 = vmatprep.mubr.msk.f32.mxu0 %vm5805_vm0, %v5804_v1  ;;  %v5423_v12 = vld [vmem:[#allocation13 + $0x28] sm:$0xff]   ;;  %v5424_v13 = vld [vmem:[#allocation13 + $0x60] sm:$0xff]  }
 0x8f5   :  { %2160 = vmatprep.subr.bf16.mxu0 %v5396_v55  ;;  %v5430_v55 = vld [vmem:[#allocation13 + $0x48] sm:$0xff]  }
 0x94a   :  { %v1774_v14 = vpop.xlane.xlu1 %1773 }
 0x94b   :  { %5542 = vrcp.f32 %v1774_v14  ;;  %v5425_v14 = vld [vmem:[#allocation13 + $0x20] sm:$0xff]  }
 0x94e   :  { %v1777_v15 = vpop.xlane.xlu1 %1776 }
 0x94f   :  { %5544 = vrcp.f32 %v1777_v15  ;;  %v5426_v15 = vld [vmem:[#allocation13 + $0x58] sm:$0xff]  }
 0x952   :  { %v1783_v16 = vpop.permute.xlu1 %1782 }
 0x953   :  { %5182 = vmatpush3.msra.mxu1 %v1783_v16  ;;  %v5427_v16 = vld [vmem:[#allocation13 + $0x18] sm:$0xff]  }
 0x954   :  { %5191 = vmatprep.subr.bf16.mxu1 %v5804_v1 }
 0x958   :  { %v5543_v17 = vpop.eup %5542 }
 0x959   :  { %v1780_v47 = vmul.f32 %v5543_v17, %v5539_v4  ;;  %v5415_v4 = vld [vmem:[#allocation10] ss:$8 sps:$4 sm:$0xff]  }
 0x95b   :  { %5184 = vmatmul.mubr.msk.f32.vlgmr.msra.gmra.mxu1 %vm600_vm2, %v1780_v47 }
 0x95c   :  { %v5545_v18 = vpop.eup %5544  ;;  %5195 = vmatprep.mubr.msk.bf16.mxu1 %vm5805_vm0, %v5804_v1  ;;  %5192 = vmatpush3.bf16.msra.mxu1 %v5392_v41 }
 0x95d   :  { %v1781_v19 = vmul.f32 %v5545_v18, %v5541_v7  ;;  %5193 = vmatprep.subr.bf16.mxu1 %v5804_v1  ;;  %v5419_v7 = vld [vmem:[#allocation13 + $0x38] sm:$0xff]  }
 0x95f   :  { %5189 = vmatmul.mubr.msk.f32.vlgmr.msra.gmra.mxu0 %vm600_vm2, %v1781_v19 }
 0x960   :  { %2192 = vmatprep.mubr.bf16.mxu0 %v5803_v0  ;;  %5194 = vmatpush3.bf16.msra.mxu1 %v5393_v45 }
 0x961   :  { %4970 = vmatprep.subr.bf16.mxu1 %v5418_v5 }
 0x9b3   :  { %v1595_v25 = vpop.f32.mrf.mxu0 }
 0x9b4   :  { %v1602_v26 = vadd.f32 %v1595_v25, %v1209_v22 }
 0x9b5   :  { %v5169_v27 = vpop.f32.mrf.mxu0 }
 0x9b7   :  { %v1598_v29 = vpop.f32.mrf.mxu0 }
 0x9b8   :  { %v1603_v32 = vadd.f32 %v1598_v29, %v1212_v28 }
 0x9b9   :  { %v5170_v34 = vpop.f32.mrf.mxu0 }
 0xa1b   :  { %v1854_v43 = vpop.f32.mrf.mxu1 }
 0xa1d   :  { %v5185_v35 = vpop.f32.mrf.mxu1 }
 0xa1f   :  { %v1930_v36 = vpop.f32.mrf.mxu0 }
 0xa20   :  { %v1934_v37 = vpack.c.bf16 %v1930_v36, %v1854_v43 }
 0xa21   :  { %v5190_v39 = vpop.f32.mrf.mxu0 }
 0xa22   :  { %5196 = vmatmul.mubr.msk.bf16.vlgmr.msra.gmra.mxu1 %vm447_vm1, %v1934_v37 }
 0xa23   :  { %4971 = vmatpush3.bf16.msra.mxu1 %v5419_v7 }
 0xa24   :  { %4972 = vmatprep.subr.bf16.mxu1 %v5420_v8 }
 0xa27   :  { %4973 = vmatpush3.bf16.msra.mxu1 %v5421_v10 }
 0xa28   :  { %4974 = vmatprep.subr.bf16.mxu1 %v5422_v11 }
 0xa2b   :  { %4975 = vmatpush3.bf16.msra.mxu1 %v5423_v12  ;;  %v4796_v12 = vld [vmem:[#allocation15] ss:$0 sm:$0xff] }
 0xa2c   :  { %4976 = vmatprep.subr.bf16.mxu1 %v5424_v13 }
 0xa2f   :  { %4977 = vmatpush3.bf16.msra.mxu1 %v5425_v14 }
 0xa30   :  { %4978 = vmatprep.subr.bf16.mxu1 %v5426_v15 }
 0xa33   :  { %4979 = vmatpush3.bf16.msra.mxu1 %v5427_v16 }
 0xae2   :  { %v1984_v42 = vpop.f32.mrf.mxu1 }
 0xae3   :  { %v1991_v46 = vadd.f32 %v1984_v42, %v1602_v26  ;;  %v4778_v42 = vld [vmem:[%s6405_s5] ss:$0 sm:$0xff] }
 0xae4   :  { %v5197_v6 = vpop.f32.mrf.mxu1 }
 0xae5   :  { %v2000_v20 = vadd.f32 %v4777_v44, %v1991_v46 }
 0xae6   :  { %v1987_v48 = vpop.f32.mrf.mxu1 }
 0xae7   :  { %v1992_v49 = vadd.f32 %v1987_v48, %v1603_v32  ;;  %v6131_v51 = vadd.f32 %v2000_v20, %v5926_v23  ;;  %v5394_v23 = vld [vmem:[#allocation10 + $0x70] ss:$8 sps:$4 sm:$0xff]   ;;  %v4779_v48 = vld [vmem:[#allocation9] ss:$0 sm:$0xff] }
 0xae8   :  { %v5198_v9 = vpop.f32.mrf.mxu1  ;;  %2161 = vmatpush1.bf16.msra.mxu0 %v5394_v23  ;;  %v5431_v23 = vld [vmem:[#allocation13 + $0x8] sm:$0xff]  }
 0xae9   :  { %v2001_v21 = vadd.f32 %v4777_v44, %v1992_v49  ;;  %2006 = vadd.xlane.f32.xlu0 %v6131_v51  ;;  %v2013_v52 = vmul.f32 %v6131_v51, %v6131_v51  ;;  %2162 = vmatprep.subr.bf16.mxu0 %v5399_v56  ;;  %v5433_v56 = vld [vmem:[#allocation13] sm:$0xff]  }
 0xaeb   :  { %v6137_v53 = vadd.f32 %v2001_v21, %v5928_v24  ;;  %v5403_v24 = vld [vmem:[#allocation10 + $0x40] ss:$8 sps:$4 sm:$0xff]  }
 0xaec   :  { %2163 = vmatpush1.bf16.msra.mxu0 %v5397_v57  ;;  %v2068_v57 = vld [vmem:[#allocation12] sm:$0x3] }
 0xaed   :  { %2015 = vadd.xlane.f32.xlu0 %v2013_v52  ;;  %2008 = vadd.xlane.f32.xlu1 %v6137_v53  ;;  %v2014_v54 = vmul.f32 %v6137_v53, %v6137_v53 }
 0xaee   :  { %2164 = vmatprep.subr.bf16.mxu0 %v5402_v38 }
 0xaf0   :  { %2165 = vmatpush1.bf16.msra.mxu0 %v5400_v50  ;;  %v2077_v50 = vrot.slane %v2068_v57, %v5945_v31 }
 0xaf1   :  { %2017 = vadd.xlane.f32.xlu0 %v2014_v54  ;;  %2166 = vmatprep.subr.bf16.mxu0 %v5405_v58  ;;  %v5429_v54 = vld [vmem:[#allocation13 + $0x10] sm:$0xff]  }
 0xaf4   :  { %2167 = vmatpush1.bf16.msra.mxu0 %v5403_v24  ;;  %v2073_v24 = vrot.slane %v2068_v57, %v5951_v33 }
 0xaf5   :  { %2168 = vmatprep.subr.bf16.mxu0 %v5408_v59 }
 0xaf8   :  { %2169 = vmatpush1.bf16.msra.mxu0 %v5406_v60 }
 0xaf9   :  { %2170 = vmatprep.subr.bf16.mxu0 %v5411_v61 }
 0xafc   :  { %2171 = vmatpush1.bf16.msra.mxu0 %v5409_v62 }
 0xafd   :  { %2172 = vmatprep.subr.bf16.mxu0 %v5414_v63 }
 0xb00   :  { %2173 = vmatpush1.bf16.msra.mxu0 %v5412_v2 }
 0xb01   :  { %2174 = vmatprep.subr.bf16.mxu0 %v5417_v3 }
 0xb04   :  { %2175 = vmatpush1.bf16.msra.mxu0 %v5415_v4 }
 0xb72   :  { %v2007_v17 = vpop.xlane.xlu0 %2006 }
 0xb73   :  { %v2011_v47 = vmul.f32 0.0078125, %v2007_v17 }
 0xb75   :  { %v2021_v41 = vmul.f32 %v2011_v47, %v2011_v47  ;;  %v2027_v36 = vsub.f32 %v6131_v51, %v2011_v47  ;;  %v5428_v51 = vld [vmem:[#allocation13 + $0x50] sm:$0xff]  }
 0xb76   :  { %v2016_v18 = vpop.xlane.xlu0 %2015  ;;  %v2009_v19 = vpop.xlane.xlu1 %2008  ;;  %4980 = vmatprep.subr.bf16.mxu1 %v5428_v51  ;;  %v5462_v51 = vld [vmem:[#allocation4 + $0xc0] ss:$12 sps:$4 sm:$0xff]  }
 0xb77   :  { %v2019_v45 = vmul.f32 0.0078125, %v2016_v18  ;;  %v2012_v22 = vmul.f32 0.0078125, %v2009_v19  ;;  %4981 = vmatpush3.bf16.msra.mxu1 %v5429_v54  ;;  %v5465_v54 = vld [vmem:[#allocation4 + $0xc8] ss:$12 sps:$4 sm:$0xff]  }
 0xb78   :  { %4982 = vmatprep.subr.bf16.mxu1 %v5430_v55 }
 0xb79   :  { %v2023_v25 = vsub.f32 %v2019_v45, %v2021_v41  ;;  %v2022_v28 = vmul.f32 %v2012_v22, %v2012_v22  ;;  %v2028_v44 = vsub.f32 %v6137_v53, %v2012_v22  ;;  %v5432_v53 = vld [vmem:[#allocation13 + $0x40] sm:$0xff]  }
 0xb7a   :  { %v2018_v26 = vpop.xlane.xlu0 %2017 }
 0xb7b   :  { %v2025_v27 = vmax.f32 %v2023_v25, 0.0  ;;  %v2020_v29 = vmul.f32 0.0078125, %v2018_v26  ;;  %4983 = vmatpush3.bf16.msra.mxu1 %v5431_v23  ;;  %v5436_v25 = vld [vmem:[#allocation4 + $0x16c] ss:$12 sps:$4 sm:$0xff]   ;;  %v5434_v26 = vld [vmem:[#allocation4 + $0x168] ss:$12 sps:$4 sm:$0xff]  }
 0xb7c   :  { %4984 = vmatprep.subr.bf16.mxu1 %v5432_v53  ;;  %2613 = vmatprep.subr.bf16.mxu0 %v5436_v25 }
 0xb7d   :  { %v2029_v32 = vadd.f32 1e-05, %v2025_v27  ;;  %v2024_v34 = vsub.f32 %v2020_v29, %v2022_v28  ;;  %v5437_v27 = vld [vmem:[#allocation4 + $0x170] ss:$12 sps:$4 sm:$0xff]   ;;  %v5440_v28 = vld [vmem:[#allocation4 + $0x154] ss:$12 sps:$4 sm:$0xff]  }
 0xb7e   :  { %v5438_v29 = vld [vmem:[#allocation4 + $0x150] ss:$12 sps:$4 sm:$0xff]  }
 0xb7f   :  { %5546 = vrsqrt.f32 %v2029_v32  ;;  %v2026_v43 = vmax.f32 %v2024_v34, 0.0  ;;  %4985 = vmatpush3.bf16.msra.mxu1 %v5433_v56  ;;  %v5441_v32 = vld [vmem:[#allocation4 + $0x158] ss:$12 sps:$4 sm:$0xff]   ;;  %v5444_v34 = vld [vmem:[#allocation4 + $0x13c] ss:$12 sps:$4 sm:$0xff]  }
 0xb80   :  { %5199 = vmatprep.subr.bf16.mxu1 %v5804_v1 }
 0xb81   :  { %v2030_v35 = vadd.f32 1e-05, %v2026_v43  ;;  %v5442_v43 = vld [vmem:[#allocation4 + $0x138] ss:$12 sps:$4 sm:$0xff]  }
 0xb83   :  { %5548 = vrsqrt.f32 %v2030_v35  ;;  %v5445_v35 = vld [vmem:[#allocation4 + $0x140] ss:$12 sps:$4 sm:$0xff]  }
 0xb8c   :  { %v5547_v37 = vpop.eup %5546 }
 0xb8d   :  { %v2033_v39 = vmul.f32 %v5547_v37, %v2027_v36  ;;  %v5446_v36 = vld [vmem:[#allocation4 + $0x120] ss:$12 sps:$4 sm:$0xff]   ;;  %v5448_v37 = vld [vmem:[#allocation4 + $0x124] ss:$12 sps:$4 sm:$0xff]  }
 0xb8f   :  { %v2041_v20 = vmul.f32 %v4778_v42, %v2033_v39  ;;  %v5449_v39 = vld [vmem:[#allocation4 + $0x128] ss:$12 sps:$4 sm:$0xff]  }
 0xb90   :  { %v5549_v46 = vpop.eup %5548 }
 0xb91   :  { %v2034_v6 = vmul.f32 %v5549_v46, %v2028_v44  ;;  %v2049_v9 = vadd.f32 %v4779_v48, %v2041_v20  ;;  %v5450_v44 = vld [vmem:[#allocation4 + $0x108] ss:$12 sps:$4 sm:$0xff]   ;;  %v5453_v46 = vld [vmem:[#allocation4 + $0x110] ss:$12 sps:$4 sm:$0xff]  }
 0xb92   :  { %v5454_v20 = vld [vmem:[#allocation4 + $0xf0] ss:$12 sps:$4 sm:$0xff]  }
 0xb93   :  { %v2042_v49 = vmul.f32 %v4778_v42, %v2034_v6  ;;  %v5452_v42 = vld [vmem:[#allocation4 + $0x10c] ss:$12 sps:$4 sm:$0xff]   ;;  %v5456_v6 = vld [vmem:[#allocation4 + $0xf4] ss:$12 sps:$4 sm:$0xff]  }
 0xb95   :  { %v2050_v21 = vadd.f32 %v4779_v48, %v2042_v49  ;;  %v5457_v48 = vld [vmem:[#allocation4 + $0xf8] ss:$12 sps:$4 sm:$0xff]   ;;  %v5460_v49 = vld [vmem:[#allocation4 + $0xdc] ss:$12 sps:$4 sm:$0xff]  }
 0xb97   :  { %v2051_v52 = vpack.c.bf16 %v2050_v21, %v2049_v9 }
 0xb99   :  { %2193 = vmatmul.mubr.bf16.vlgmr.msra.gmra.mxu0 %v2051_v52  ;;  %v5464_v52 = vld [vmem:[#allocation4 + $0xc4] ss:$12 sps:$4 sm:$0xff]  }
 0xb9a   :  { %2645 = vmatprep.mubr.bf16.mxu0 %v5803_v0  ;;  %2614 = vmatpush1.bf16.msra.mxu0 %v5434_v26 }
 0xb9b   :  { %2615 = vmatprep.subr.bf16.mxu0 %v5440_v28 }
 0xb9e   :  { %2616 = vmatpush1.bf16.msra.mxu0 %v5438_v29 }
 0xb9f   :  { %2617 = vmatprep.subr.bf16.mxu0 %v5444_v34 }
 0xba2   :  { %2618 = vmatpush1.bf16.msra.mxu0 %v5442_v43 }
 0xba3   :  { %2619 = vmatprep.subr.bf16.mxu0 %v5448_v37 }
 0xba6   :  { %2620 = vmatpush1.bf16.msra.mxu0 %v5446_v36 }
 0xba7   :  { %2621 = vmatprep.subr.bf16.mxu0 %v5452_v42 }
 0xbaa   :  { %2622 = vmatpush1.bf16.msra.mxu0 %v5450_v44 }
 0xbab   :  { %2623 = vmatprep.subr.bf16.mxu0 %v5456_v6 }
 0xbae   :  { %2624 = vmatpush1.bf16.msra.mxu0 %v5454_v20 }
 0xbaf   :  { %2625 = vmatprep.subr.bf16.mxu0 %v5460_v49 }
 0xc59   :  { %v2194_v38 = vpop.f32.mrf.mxu0 }
 0xc5a   :  { %v2195_v62 = vadd.f32 %v2194_v38, %v2073_v24 }
 0xc5b   :  { %v2196_v58 = vpop.f32.mrf.mxu0 }
 0xc5c   :  { %v2197_v60 = vadd.f32 %v2196_v58, %v2077_v50  ;;  %v2203_v7 = vmax.f32 %v2195_v62, 0.0 }
 0xc5d   :  { %v2198_v59 = vpop.f32.mrf.mxu0 }
 0xc5e   :  { %v2199_v61 = vadd.f32 %v2198_v59, %v2073_v24  ;;  %v2204_v4 = vmax.f32 %v2197_v60, 0.0 }
 0xc5f   :  { %v2200_v63 = vpop.f32.mrf.mxu0 }
 0xc60   :  { %v2201_v2 = vadd.f32 %v2200_v63, %v2077_v50  ;;  %v2205_v3 = vmax.f32 %v2199_v61, 0.0 }
 0xc62   :  { %v2206_v5 = vmax.f32 %v2201_v2, 0.0  ;;  %v2207_v10 = vpack.c.bf16 %v2205_v3, %v2203_v7  ;;  %v4813_v7 = vld [vmem:[%s6411_s11] ss:$0 sm:$0xff] }
 0xc64   :  { %v2208_v8 = vpack.c.bf16 %v2206_v5, %v2204_v4 }
 0xc66   :  { %2376 = vmatprep.mubr.bf16.mxu1 %v2208_v8 }
 0xc67   :  { %2377 = vmatmul.mubr.bf16.vlgmr.msra.gmra.mxu1 %v2207_v10 }
 0xc68   :  { %5215 = vmatprep.mubr.msk.bf16.mxu1 %vm5805_vm0, %v5804_v1  ;;  %5200 = vmatpush3.bf16.msra.mxu1 %v5437_v27 }
 0xc69   :  { %5201 = vmatprep.subr.bf16.mxu1 %v5804_v1 }
 0xc6c   :  { %5202 = vmatpush3.bf16.msra.mxu1 %v5441_v32 }
 0xc6d   :  { %5203 = vmatprep.subr.bf16.mxu1 %v5804_v1 }
 0xc70   :  { %5204 = vmatpush3.bf16.msra.mxu1 %v5445_v35 }
 0xc71   :  { %5205 = vmatprep.subr.bf16.mxu1 %v5804_v1 }
 0xc74   :  { %5206 = vmatpush3.bf16.msra.mxu1 %v5449_v39 }
 0xc75   :  { %5207 = vmatprep.subr.bf16.mxu1 %v5804_v1 }
 0xc78   :  { %5208 = vmatpush3.bf16.msra.mxu1 %v5453_v46 }
 0xc79   :  { %5209 = vmatprep.subr.bf16.mxu1 %v5804_v1 }
 0xc7c   :  { %5210 = vmatpush3.bf16.msra.mxu1 %v5457_v48 }
 0xc7d   :  { %5211 = vmatprep.subr.bf16.mxu1 %v5804_v1 }
 0xd27   :  { %v4986_v11 = vpop.f32.mrf.mxu1 }
 0xd29   :  { %v4987_v13 = vpop.f32.mrf.mxu1 }
 0xd2a   :  { %v4988_v14 = vadd.f32 %v4987_v13, %v4986_v11 }
 0xd2b   :  { %v4989_v15 = vpop.f32.mrf.mxu1 }
 0xd2c   :  { %v2379_v16 = vadd.f32 %v4988_v14, %v4796_v12  ;;  %v4814_v14 = vld [vmem:[%s6412_s12] ss:$0 sm:$0xff] }
 0xd2d   :  { %v4990_v17 = vpop.f32.mrf.mxu1 }
 0xd2e   :  { %v4991_v47 = vadd.f32 %v4990_v17, %v4989_v15  ;;  %v6153_v18 = vadd.f32 %v2379_v16, %v2049_v9  ;;  %v5458_v9 = vld [vmem:[#allocation4 + $0xd8] ss:$12 sps:$4 sm:$0xff]  }
 0xd2f   :  { %2626 = vmatpush1.bf16.msra.mxu0 %v5458_v9 }
 0xd30   :  { %v2382_v19 = vadd.f32 %v4991_v47, %v4796_v12  ;;  %2389 = vadd.xlane.f32.xlu0 %v6153_v18  ;;  %v2395_v22 = vmul.f32 %v6153_v18, %v6153_v18  ;;  %2627 = vmatprep.subr.bf16.mxu0 %v5464_v52 }
 0xd32   :  { %v6156_v41 = vadd.f32 %v2382_v19, %v2050_v21  ;;  %v5461_v21 = vld [vmem:[#allocation4 + $0xe0] ss:$12 sps:$4 sm:$0xff]  }
 0xd33   :  { %5212 = vmatpush3.bf16.msra.mxu1 %v5461_v21  ;;  %2628 = vmatpush1.bf16.msra.mxu0 %v5462_v51 }
 0xd34   :  { %2391 = vadd.xlane.f32.xlu0 %v6156_v41  ;;  %v2396_v45 = vmul.f32 %v6156_v41, %v6156_v41  ;;  %5213 = vmatprep.subr.bf16.mxu1 %v5804_v1 }
 0xd35   :  { %5219 = vmatprep.subr.mxu0 %v5804_v1 }
 0xd36   :  { %2399 = vadd.xlane.f32.xlu1 %v2396_v45 }
 0xd37   :  { %5214 = vmatpush3.bf16.msra.mxu1 %v5465_v54 }
 0xd38   :  { %2397 = vadd.xlane.f32.xlu0 %v2395_v22  ;;  %5229 = vmatprep.subr.mxu1 %v5804_v1 }
 0xdb9   :  { %v2390_v55 = vpop.xlane.xlu0 %2389 }
 0xdba   :  { %v2393_v53 = vmul.f32 0.0078125, %v2390_v55 }
 0xdbc   :  { %v2403_v58 = vmul.f32 %v2393_v53, %v2393_v53  ;;  %v2409_v8 = vsub.f32 %v6153_v18, %v2393_v53  ;;  %v4815_v18 = vld [vmem:[%s6402_s2 + $0x3] sm:$0x7] }
 0xdbd   :  { %v2392_v23 = vpop.xlane.xlu0 %2391  ;;  %v2481_v19 = vrot.slane %v4815_v18, %v214_v40  ;;  %v2473_v26 = vrot.slane %v4815_v18, %v5951_v33 }
 0xdbe   :  { %v2394_v56 = vmul.f32 0.0078125, %v2392_v23 }
 0xdbf   :  { %v2400_v57 = vpop.xlane.xlu1 %2399 }
 0xdc0   :  { %v2404_v38 = vmul.f32 %v2394_v56, %v2394_v56  ;;  %v2402_v50 = vmul.f32 0.0078125, %v2400_v57  ;;  %v2410_v4 = vsub.f32 %v6156_v41, %v2394_v56  ;;  %v2477_v41 = vrot.slane %v4815_v18, %v5945_v31 }
 0xdc1   :  { %v2398_v24 = vpop.xlane.xlu0 %2397 }
 0xdc2   :  { %v2406_v59 = vsub.f32 %v2402_v50, %v2404_v38  ;;  %v2401_v60 = vmul.f32 0.0078125, %v2398_v24 }
 0xdc4   :  { %v2408_v61 = vmax.f32 %v2406_v59, 0.0  ;;  %v2405_v62 = vsub.f32 %v2401_v60, %v2403_v58 }
 0xdc6   :  { %v2412_v63 = vadd.f32 1e-05, %v2408_v61  ;;  %v2407_v2 = vmax.f32 %v2405_v62, 0.0 }
 0xdc8   :  { %5550 = vrsqrt.f32 %v2412_v63  ;;  %v2411_v3 = vadd.f32 1e-05, %v2407_v2 }
 0xdca   :  { %5552 = vrsqrt.f32 %v2411_v3 }
 0xdd5   :  { %v5551_v5 = vpop.eup %5550 }
 0xdd6   :  { %v2416_v10 = vmul.f32 %v5551_v5, %v2410_v4 }
 0xdd7   :  { %v5553_v11 = vpop.eup %5552 }
 0xdd8   :  { %v2415_v12 = vmul.f32 %v5553_v11, %v2409_v8  ;;  %v2424_v13 = vmul.f32 %v4813_v7, %v2416_v10 }
 0xdda   :  { %v2423_v15 = vmul.f32 %v4813_v7, %v2415_v12  ;;  %v6182_v17 = vadd.f32 %v4814_v14, %v2424_v13 }
 0xddc   :  { %v6180_v16 = vadd.f32 %v4814_v14, %v2423_v15 }
 0xdde   :  { %v2433_v47 = vpack.c.bf16 %v6182_v17, %v6180_v16 }
 0xde0   :  { %2646 = vmatmul.mubr.bf16.vlgmr.msra.gmra.mxu0 %v2433_v47  ;;  %5216 = vmatmul.mubr.bf16.vlgmr.msra.gmra.mxu1 %v2433_v47 }
 0xde1   :  { %5221 = vmatprep.mubr.msk.f32.mxu0 %vm5805_vm0, %v5804_v1  ;;  %5231 = vmatprep.mubr.msk.f32.mxu1 %vm5805_vm0, %v5804_v1 }
 0xea0   :  { %v2647_v45 = vpop.f32.mrf.mxu0  ;;  %v2690_v22 = vpop.f32.mrf.mxu1 }
 0xea1   :  { %v6196_v25 = vadd.f32 %v2690_v22, %v2481_v19  ;;  %v6205_v30 = vadd.f32 %v2647_v45, %v2473_v26 }
 0xea2   :  { %v2649_v27 = vpop.f32.mrf.mxu0  ;;  %v5217_v28 = vpop.f32.mrf.mxu1 }
 0xea3   :  { %v6199_v29 = vadd.f32 %v2649_v27, %v2477_v41  ;;  %5230 = vmatpush3.msra.mxu1 %v6196_v25 }
 0xea4   :  { %v2651_v32 = vpop.f32.mrf.mxu0  ;;  %v2693_v34 = vpop.f32.mrf.mxu1  ;;  %5239 = vmatprep.subr.mxu1 %v5804_v1 }
 0xea5   :  { %5220 = vmatpush3.xpose.msk.msra.mxu0 %vm447_vm1, %v6199_v29  ;;  %v6216_v36 = vadd.f32 %v2651_v32, %v2473_v26  ;;  %v6219_v37 = vadd.f32 %v2693_v34, %v2481_v19 }
 0xea6   :  { %v2653_v40 = vpop.f32.mrf.mxu0  ;;  %v5218_v43 = vpop.f32.mrf.mxu1  ;;  %5224 = vmatprep.subr.mxu0 %v5804_v1 }
 0xea7   :  { %v6208_v35 = vadd.f32 %v2653_v40, %v2477_v41 }
 0xea8   :  { %5222 = vmatmul.mubr.msk.f32.vlgmr.msra.gmra.mxu0 %vm447_vm1, %v6205_v30 }
 0xea9   :  { %5225 = vmatpush3.xpose.msk.msra.mxu0 %vm447_vm1, %v6208_v35  ;;  %5226 = vmatprep.mubr.msk.f32.mxu0 %vm5805_vm0, %v5804_v1 }
 0xeaa   :  { %5234 = vmatprep.subr.mxu0 %v5804_v1 }
 0xeac   :  { %5227 = vmatmul.mubr.msk.f32.vlgmr.msra.gmra.mxu0 %vm447_vm1, %v6216_v36 }
 0xead   :  { %5235 = vmatpush3.msra.mxu0 %v6219_v37  ;;  %5236 = vmatprep.mubr.msk.f32.mxu0 %vm5805_vm0, %v5804_v1 }
 0xeae   :  { %5244 = vmatprep.subr.mxu0 %v5804_v1 }
 0xf68   :  { %v2786_v39 = vpop.f32.mrf.mxu0 }
 0xf69   :  { %v2866_v42 = vsel %vm600_vm2, %v2786_v39, -inf }
 0xf6a   :  { %2867 = vmax.xlane.f32.xlu0 %v2866_v42  ;;  %v5223_v44 = vpop.f32.mrf.mxu0 }
 0xf6c   :  { %v2862_v46 = vpop.f32.mrf.mxu0 }
 0xf6d   :  { %v2869_v6 = vsel %vm600_vm2, %v2862_v46, -inf }
 0xf6e   :  { %2870 = vmax.xlane.f32.xlu1 %v2869_v6  ;;  %v5228_v20 = vpop.f32.mrf.mxu0  ;;  %v5467_v6 = vld [vmem:[#allocation6 + $0x40] sm:$0xff]  }
 0xf7f   :  { %3115 = vrot.lane.b32.xlu1 %v6208_v35, %s5806_s18 }
 0xf83   :  { %3035 = vrot.lane.b32.xlu1 %v6205_v30, %s5806_s18 }
 0xff3   :  { %v2868_v48 = vpop.xlane.xlu0 %2867 }
 0xff4   :  { %v2872_v49 = vsub.f32 %v2786_v39, %v2868_v48  ;;  %v5468_v39 = vld [vmem:[#allocation6 + $0x58] sm:$0xff]  }
 0xff6   :  { %v2874_v9 = vmul.f32 1.442695, %v2872_v49  ;;  %v5469_v49 = vld [vmem:[#allocation6 + $0x50] sm:$0xff]  }
 0xff7   :  { %v2871_v21 = vpop.xlane.xlu1 %2870 }
 0xff8   :  { %5554 = vpow2.f32 %v2874_v9  ;;  %v2873_v52 = vsub.f32 %v2862_v46, %v2871_v21  ;;  %v5466_v46 = vld [vmem:[#allocation6 + $0x48] sm:$0xff]  }
 0xffa   :  { %v2876_v51 = vmul.f32 1.442695, %v2873_v52 }
 0xffb   :  { %v3116_v56 = vpop.permute.xlu1 %3115 }
 0xffc   :  { %5556 = vpow2.f32 %v2876_v51 }
 0xfff   :  { %v3036_v57 = vpop.permute.xlu1 %3035 }
0x1005   :  { %v5555_v54 = vpop.eup %5554 }
0x1006   :  { %v2878_v55 = vsel %vm600_vm2, %v5555_v54, 0.0 }
0x1007   :  { %2879 = vadd.xlane.f32.xlu0 %v2878_v55 }
0x1009   :  { %v5557_v23 = vpop.eup %5556 }
0x100a   :  { %v2881_v53 = vsel %vm600_vm2, %v5557_v23, 0.0 }
0x100b   :  { %2882 = vadd.xlane.f32.xlu1 %v2881_v53 }
0x101c   :  { %3113 = vrot.lane.b32.xlu1 %v6216_v36, %s5806_s18 }
0x101d   :  { %3037 = vrot.lane.b32.xlu0 %v6199_v29, %s5806_s18 }
0x1090   :  { %v2880_v38 = vpop.xlane.xlu0 %2879 }
0x1091   :  { %5558 = vrcp.f32 %v2880_v38 }
0x1094   :  { %v2883_v50 = vpop.xlane.xlu1 %2882  ;;  %v3038_v59 = vpop.permute.xlu0 %3037 }
0x1095   :  { %5560 = vrcp.f32 %v2883_v50 }
0x1098   :  { %v3114_v62 = vpop.permute.xlu1 %3113 }
0x109e   :  { %v5559_v24 = vpop.eup %5558 }
0x109f   :  { %v2886_v58 = vmul.f32 %v5559_v24, %v5555_v54 }
0x10a1   :  { %5232 = vmatmul.mubr.msk.f32.vlgmr.msra.gmra.mxu1 %vm600_vm2, %v2886_v58 }
0x10a2   :  { %v5561_v60 = vpop.eup %5560  ;;  %5240 = vmatpush3.xpose.msk.msra.mxu1 %vm447_vm1, %v3038_v59  ;;  %5241 = vmatprep.mubr.msk.f32.mxu1 %vm5805_vm0, %v5804_v1 }
0x10a3   :  { %v2887_v61 = vmul.f32 %v5561_v60, %v5557_v23  ;;  %5249 = vmatprep.subr.mxu1 %v5804_v1 }
0x10a5   :  { %5237 = vmatmul.mubr.msk.f32.vlgmr.msra.gmra.mxu0 %vm600_vm2, %v2887_v61  ;;  %5242 = vmatmul.mubr.msk.f32.vlgmr.msra.gmra.mxu1 %vm447_vm1, %v3036_v57 }
0x10a6   :  { %5245 = vmatpush3.xpose.msk.msra.mxu0 %vm447_vm1, %v3116_v56  ;;  %5246 = vmatprep.mubr.msk.f32.mxu0 %vm5805_vm0, %v5804_v1 }
0x10a7   :  { %5254 = vmatprep.subr.mxu0 %v5804_v1  ;;  %5251 = vmatprep.mubr.msk.f32.mxu1 %vm5805_vm0, %v5804_v1 }
0x10a9   :  { %5247 = vmatmul.mubr.msk.f32.vlgmr.msra.gmra.mxu0 %vm447_vm1, %v3114_v62 }
0x10aa   :  { %5256 = vmatprep.mubr.msk.f32.mxu0 %vm5805_vm0, %v5804_v1 }
0x1161   :  { %v6255_v63 = vpop.f32.mrf.mxu1 }
0x1163   :  { %v5233_v2 = vpop.f32.mrf.mxu1 }
0x1165   :  { %v3030_v3 = vpop.f32.mrf.mxu0  ;;  %v3109_v4 = vpop.f32.mrf.mxu1 }
0x1166   :  { %v3034_v5 = vpack.c.bf16 %v3030_v3, %v6255_v63  ;;  %v3191_v7 = vsel %vm600_vm2, %v3109_v4, -inf }
0x1167   :  { %3192 = vmax.xlane.f32.xlu0 %v3191_v7  ;;  %v5238_v8 = vpop.f32.mrf.mxu0  ;;  %v5243_v10 = vpop.f32.mrf.mxu1 }
0x1169   :  { %v3187_v11 = vpop.f32.mrf.mxu0 }
0x116a   :  { %v3194_v12 = vsel %vm600_vm2, %v3187_v11, -inf }
0x116b   :  { %3195 = vmax.xlane.f32.xlu1 %v3194_v12  ;;  %v5248_v13 = vpop.f32.mrf.mxu0 }
0x117c   :  { %3291 = vrot.lane.b32.xlu1 %v6219_v37, %s5806_s18 }
0x1180   :  { %3560 = vrot.lane.b32.xlu1 %v6208_v35, %s5795_s15 }
0x1184   :  { %3558 = vrot.lane.b32.xlu1 %v6216_v36, %s5795_s15 }
0x1188   :  { %3480 = vrot.lane.b32.xlu1 %v6205_v30, %s5795_s15 }
0x118c   :  { %3871 = vrot.lane.b32.xlu1 %v6199_v29, %s5800_s3 }
0x11f0   :  { %v3193_v14 = vpop.xlane.xlu0 %3192 }
0x11f1   :  { %v3197_v15 = vsub.f32 %v3109_v4, %v3193_v14 }
0x11f3   :  { %v3199_v47 = vmul.f32 1.442695, %v3197_v15 }
0x11f4   :  { %v3196_v18 = vpop.xlane.xlu1 %3195 }
0x11f5   :  { %5562 = vpow2.f32 %v3199_v47  ;;  %v3198_v19 = vsub.f32 %v3187_v11, %v3196_v18 }
0x11f7   :  { %v3201_v41 = vmul.f32 1.442695, %v3198_v19 }
0x11f8   :  { %v3292_v45 = vpop.permute.xlu1 %3291 }
0x11f9   :  { %5564 = vpow2.f32 %v3201_v41  ;;  %5255 = vmatpush3.msra.mxu0 %v3292_v45 }
0x11fa   :  { %5267 = vmatprep.subr.bf16.mxu0 %v5804_v1 }
0x11fc   :  { %v3561_v20 = vpop.permute.xlu1 %3560 }
0x1200   :  { %v3559_v48 = vpop.permute.xlu1 %3558 }
0x1202   :  { %v5563_v22 = vpop.eup %5562 }
0x1203   :  { %v3203_v26 = vsel %vm600_vm2, %v5563_v22, 0.0 }
0x1204   :  { %3204 = vadd.xlane.f32.xlu0 %v3203_v26  ;;  %v3481_v53 = vpop.permute.xlu1 %3480 }
0x1206   :  { %v5565_v27 = vpop.eup %5564 }
0x1207   :  { %v3206_v28 = vsel %vm600_vm2, %v5565_v27, 0.0 }
0x1208   :  { %3207 = vadd.xlane.f32.xlu0 %v3206_v28  ;;  %v3872_v10 = vpop.permute.xlu1 %3871 }
0x121e   :  { %3214 = vrot.lane.b32.xlu0 %v6196_v25, %s5806_s18 }
0x1222   :  { %3482 = vrot.lane.b32.xlu0 %v6199_v29, %s5795_s15 }
0x128d   :  { %v3205_v32 = vpop.xlane.xlu0 %3204 }
0x128e   :  { %5566 = vrcp.f32 %v3205_v32 }
0x1291   :  { %v3208_v34 = vpop.xlane.xlu0 %3207 }
0x1292   :  { %5568 = vrcp.f32 %v3208_v34 }
0x1295   :  { %v3215_v40 = vpop.permute.xlu0 %3214 }
0x1296   :  { %5250 = vmatpush3.msra.mxu1 %v3215_v40 }
0x1297   :  { %5259 = vmatprep.subr.bf16.mxu1 %v5804_v1 }
0x1299   :  { %v3483_v55 = vpop.permute.xlu0 %3482 }
0x129b   :  { %v5567_v43 = vpop.eup %5566 }
0x129c   :  { %v3211_v42 = vmul.f32 %v5567_v43, %v5563_v22 }
0x129e   :  { %5252 = vmatmul.mubr.msk.f32.vlgmr.msra.gmra.mxu1 %vm600_vm2, %v3211_v42 }
0x129f   :  { %v5569_v44 = vpop.eup %5568  ;;  %5260 = vmatpush3.bf16.msra.mxu1 %v5468_v39  ;;  %5263 = vmatprep.mubr.msk.bf16.mxu1 %vm5805_vm0, %v5804_v1 }
0x12a0   :  { %v3212_v29 = vmul.f32 %v5569_v44, %v5565_v27  ;;  %5261 = vmatprep.subr.bf16.mxu1 %v5804_v1 }
0x12a2   :  { %5257 = vmatmul.mubr.msk.f32.vlgmr.msra.gmra.mxu0 %vm600_vm2, %v3212_v29  ;;  %v5471_v29 = vld [vmem:[#allocation6 + $0x60] sm:$0xff]  }
0x12a3   :  { %5268 = vmatpush3.bf16.msra.mxu0 %v5466_v46  ;;  %5271 = vmatprep.mubr.msk.bf16.mxu0 %vm5805_vm0, %v5804_v1  ;;  %v5470_v46 = vld [vmem:[#allocation6 + $0x68] sm:$0xff]  }
0x12a4   :  { %5269 = vmatprep.subr.bf16.mxu0 %v5804_v1  ;;  %5262 = vmatpush3.bf16.msra.mxu1 %v5469_v49 }
0x12a5   :  { %5275 = vmatprep.subr.mxu1 %v5804_v1 }
0x12a7   :  { %5270 = vmatpush3.bf16.msra.mxu0 %v5467_v6 }
0x12a8   :  { %5280 = vmatprep.subr.mxu0 %v5804_v1 }
0x12aa   :  { %5272 = vmatmul.mubr.msk.bf16.vlgmr.msra.gmra.mxu0 %vm447_vm1, %v3034_v5 }
0x12ab   :  { %5281 = vmatpush3.xpose.msk.msra.mxu0 %vm447_vm1, %v3561_v20  ;;  %5282 = vmatprep.mubr.msk.f32.mxu0 %vm5805_vm0, %v5804_v1 }
0x12ac   :  { %5290 = vmatprep.subr.mxu0 %v5804_v1 }
0x12b2   :  { %5283 = vmatmul.mubr.msk.f32.vlgmr.msra.gmra.mxu0 %vm447_vm1, %v3559_v48 }
0x12b3   :  { %5292 = vmatprep.mubr.msk.f32.mxu0 %vm5805_vm0, %v5804_v1 }
0x135e   :  { %v3286_v9 = vpop.f32.mrf.mxu1 }
0x1360   :  { %v5253_v21 = vpop.f32.mrf.mxu1 }
0x1362   :  { %v3363_v52 = vpop.f32.mrf.mxu0 }
0x1363   :  { %v3367_v51 = vpack.c.bf16 %v3363_v52, %v3286_v9 }
0x1364   :  { %v5258_v54 = vpop.f32.mrf.mxu0 }
0x1365   :  { %5264 = vmatmul.mubr.msk.bf16.vlgmr.msra.gmra.mxu1 %vm447_vm1, %v3367_v51 }
0x1366   :  { %5276 = vmatpush3.xpose.msk.msra.mxu1 %vm447_vm1, %v3483_v55  ;;  %5277 = vmatprep.mubr.msk.f32.mxu1 %vm5805_vm0, %v5804_v1 }
0x1367   :  { %5285 = vmatprep.subr.mxu1 %v5804_v1 }
0x136a   :  { %v6301_v23 = vpop.f32.mrf.mxu0 }
0x136c   :  { %v5273_v56 = vpop.f32.mrf.mxu0 }
0x136d   :  { %5278 = vmatmul.mubr.msk.f32.vlgmr.msra.gmra.mxu1 %vm447_vm1, %v3481_v53 }
0x136e   :  { %v6304_v57 = vpop.f32.mrf.mxu0  ;;  %5287 = vmatprep.mubr.msk.f32.mxu1 %vm5805_vm0, %v5804_v1 }
0x1370   :  { %v5274_v38 = vpop.f32.mrf.mxu0 }
0x1372   :  { %v3632_v50 = vpop.f32.mrf.mxu0 }
0x1373   :  { %v3639_v24 = vsel %vm600_vm2, %v3632_v50, -inf }
0x1374   :  { %3640 = vmax.xlane.f32.xlu0 %v3639_v24  ;;  %v5284_v58 = vpop.f32.mrf.mxu0 }
0x138a   :  { %3734 = vrot.lane.b32.xlu0 %v6219_v37, %s5795_s15 }
0x138e   :  { %3869 = vrot.lane.b32.xlu0 %v6205_v30, %s5800_s3 }
0x1392   :  { %3947 = vrot.lane.b32.xlu0 %v6216_v36, %s5800_s3 }
0x13fd   :  { %v3641_v59 = vpop.xlane.xlu0 %3640 }
0x13fe   :  { %v3643_v60 = vsub.f32 %v3632_v50, %v3641_v59 }
0x1400   :  { %v3646_v61 = vmul.f32 1.442695, %v3643_v60 }
0x1401   :  { %v3735_v62 = vpop.permute.xlu0 %3734 }
0x1402   :  { %5570 = vpow2.f32 %v3646_v61  ;;  %5291 = vmatpush3.msra.mxu0 %v3735_v62 }
0x1403   :  { %5303 = vmatprep.subr.mxu0 %v5804_v1 }
0x1405   :  { %v3870_v14 = vpop.permute.xlu0 %3869 }
0x1409   :  { %v3948_v15 = vpop.permute.xlu0 %3947 }
0x140f   :  { %v5571_v63 = vpop.eup %5570 }
0x1410   :  { %v3651_v2 = vsel %vm600_vm2, %v5571_v63, 0.0 }
0x1411   :  { %3652 = vadd.xlane.f32.xlu1 %v3651_v2  ;;  %v5473_v2 = vld [vmem:[#allocation6 + $0x70] sm:$0xff]  }
0x1422   :  { %3949 = vrot.lane.b32.xlu1 %v6208_v35, %s5800_s3 }
0x1425   :  { %v6319_v3 = vpop.f32.mrf.mxu1 }
0x1427   :  { %v5265_v30 = vpop.f32.mrf.mxu1 }
0x1428   :  { %v3474_v30 = vadd.f32 %v6301_v23, %v6319_v3 }
0x1429   :  { %v6321_v4 = vpop.f32.mrf.mxu1 }
0x142b   :  { %v5266_v36 = vpop.f32.mrf.mxu1 }
0x142d   :  { %v3554_v5 = vpop.f32.mrf.mxu1 }
0x142e   :  { %v3636_v8 = vsel %vm600_vm2, %v3554_v5, -inf }
0x142f   :  { %v5279_v7 = vpop.f32.mrf.mxu1 }
0x1446   :  { %3637 = vmax.xlane.f32.xlu1 %v3636_v8  ;;  %v3477_v8 = vadd.f32 %v6304_v57, %v6321_v4 }
0x149a   :  { %v3653_v11 = vpop.xlane.xlu1 %3652 }
0x149b   :  { %5572 = vrcp.f32 %v3653_v11 }
0x149e   :  { %v3950_v35 = vpop.permute.xlu1 %3949 }
0x14a8   :  { %v5573_v12 = vpop.eup %5572 }
0x14a9   :  { %v3657_v13 = vmul.f32 %v5573_v12, %v5571_v63  ;;  %v5472_v63 = vld [vmem:[#allocation6 + $0x78] sm:$0xff]  }
0x14ab   :  { %5293 = vmatmul.mubr.msk.f32.vlgmr.msra.gmra.mxu0 %vm600_vm2, %v3657_v13 }
0x14ac   :  { %5304 = vmatpush3.xpose.msk.msra.mxu0 %vm447_vm1, %v3872_v10  ;;  %5305 = vmatprep.mubr.msk.f32.mxu0 %vm5805_vm0, %v5804_v1 }
0x14ad   :  { %5308 = vmatprep.subr.mxu0 %v5804_v1 }
0x14af   :  { %5306 = vmatmul.mubr.msk.f32.vlgmr.msra.gmra.mxu0 %vm447_vm1, %v3870_v14 }
0x14b0   :  { %5309 = vmatpush3.xpose.msk.msra.mxu0 %vm447_vm1, %v3950_v35  ;;  %5310 = vmatprep.mubr.msk.f32.mxu0 %vm5805_vm0, %v5804_v1 }
0x14b1   :  { %5313 = vmatprep.subr.mxu0 %v5804_v1 }
0x14b3   :  { %5311 = vmatmul.mubr.msk.f32.vlgmr.msra.gmra.mxu0 %vm447_vm1, %v3948_v15 }
0x14b4   :  { %5315 = vmatprep.mubr.msk.f32.mxu0 %vm5805_vm0, %v5804_v1 }
0x14cf   :  { %v3638_v47 = vpop.xlane.xlu1 %3637 }
0x14d0   :  { %v3642_v18 = vsub.f32 %v3554_v5, %v3638_v47  ;;  %v4876_v47 = vld [vmem:[#allocation7 + $0x1] ss:$0 sm:$0xff] }
0x14d2   :  { %v3644_v19 = vmul.f32 1.442695, %v3642_v18 }
0x14d4   :  { %5574 = vpow2.f32 %v3644_v19 }
0x14e1   :  { %v5575_v41 = vpop.eup %5574 }
0x14e2   :  { %v3648_v45 = vsel %vm600_vm2, %v5575_v41, 0.0 }
0x14e3   :  { %3649 = vadd.xlane.f32.xlu0 %v3648_v45 }
0x14f9   :  { %3658 = vrot.lane.b32.xlu0 %v6196_v25, %s5795_s15 }
0x14fd   :  { %4123 = vrot.lane.b32.xlu0 %v6219_v37, %s5800_s3 }
0x156b   :  { %v3806_v22 = vpop.f32.mrf.mxu0 }
0x156c   :  { %v3650_v26 = vpop.xlane.xlu0 %3649 }
0x156d   :  { %5576 = vrcp.f32 %v3650_v26  ;;  %v5294_v27 = vpop.f32.mrf.mxu0 }
0x156f   :  { %v3943_v28 = vpop.f32.mrf.mxu0 }
0x1570   :  { %v3659_v32 = vpop.permute.xlu0 %3658  ;;  %v4025_v34 = vsel %vm600_vm2, %v3943_v28, -inf }
0x1571   :  { %5286 = vmatpush3.msra.mxu1 %v3659_v32  ;;  %4026 = vmax.xlane.f32.xlu1 %v4025_v34  ;;  %v5307_v40 = vpop.f32.mrf.mxu0  ;;  %v5479_v32 = vld [vmem:[#allocation10 + $0xe4] ss:$8 sps:$4 sm:$0xff]   ;;  %v5477_v34 = vld [vmem:[#allocation10 + $0xe0] ss:$8 sps:$4 sm:$0xff]  }
0x1572   :  { %5295 = vmatprep.subr.bf16.mxu1 %v5804_v1  ;;  %v5482_v40 = vld [vmem:[#allocation10 + $0xd4] ss:$8 sps:$4 sm:$0xff]  }
0x1573   :  { %v4021_v43 = vpop.f32.mrf.mxu0 }
0x1574   :  { %v4028_v39 = vsel %vm600_vm2, %v4021_v43, -inf  ;;  %v4124_v50 = vpop.permute.xlu0 %4123 }
0x1575   :  { %4029 = vmax.xlane.f32.xlu1 %v4028_v39  ;;  %v5312_v42 = vpop.f32.mrf.mxu0  ;;  %v5485_v39 = vld [vmem:[#allocation10 + $0xc4] ss:$8 sps:$4 sm:$0xff]  }
0x1576   :  { %v5488_v42 = vld [vmem:[#allocation10 + $0xb4] ss:$8 sps:$4 sm:$0xff]  }
0x157a   :  { %v5577_v44 = vpop.eup %5576 }
0x157b   :  { %v3656_v37 = vmul.f32 %v5577_v44, %v5575_v41  ;;  %v5486_v44 = vld [vmem:[#allocation10 + $0xb0] ss:$8 sps:$4 sm:$0xff]  }
0x157d   :  { %5288 = vmatmul.mubr.msk.f32.vlgmr.msra.gmra.mxu1 %vm600_vm2, %v3656_v37  ;;  %v5491_v37 = vld [vmem:[#allocation10 + $0xa4] ss:$8 sps:$4 sm:$0xff]  }
0x157e   :  { %5299 = vmatprep.mubr.msk.bf16.mxu1 %vm5805_vm0, %v5804_v1  ;;  %5296 = vmatpush3.bf16.msra.mxu1 %v5470_v46  ;;  %v5489_v46 = vld [vmem:[#allocation10 + $0xa0] ss:$8 sps:$4 sm:$0xff]  }
0x157f   :  { %5297 = vmatprep.subr.bf16.mxu1 %v5804_v1 }
0x1582   :  { %5298 = vmatpush3.bf16.msra.mxu1 %v5471_v29  ;;  %v5494_v29 = vld [vmem:[#allocation10 + $0x94] ss:$8 sps:$4 sm:$0xff]  }
0x1583   :  { %5318 = vmatprep.subr.mxu1 %v5804_v1 }
0x15fa   :  { %v4027_v6 = vpop.xlane.xlu1 %4026 }
0x15fb   :  { %v4031_v20 = vsub.f32 %v3943_v28, %v4027_v6  ;;  %v5476_v28 = vld [vmem:[#allocation10 + $0xf4] ss:$8 sps:$4 sm:$0xff]   ;;  %v5492_v6 = vld [vmem:[#allocation10 + $0x90] ss:$8 sps:$4 sm:$0xff]  }
0x15fd   :  { %v4033_v48 = vmul.f32 1.442695, %v4031_v20  ;;  %v5497_v20 = vld [vmem:[#allocation10 + $0x84] ss:$8 sps:$4 sm:$0xff]  }
0x15fe   :  { %v4030_v49 = vpop.xlane.xlu1 %4029 }
0x15ff   :  { %5578 = vpow2.f32 %v4033_v48  ;;  %v4032_v9 = vsub.f32 %v4021_v43, %v4030_v49  ;;  %v5480_v43 = vld [vmem:[#allocation10 + $0xd0] ss:$8 sps:$4 sm:$0xff]   ;;  %v5495_v48 = vld [vmem:[#allocation10 + $0x80] ss:$8 sps:$4 sm:$0xff]  }
0x1600   :  { %v5498_v49 = vld [vmem:[#allocation13 + $0xf8] sm:$0xff]  }
0x1601   :  { %v4035_v21 = vmul.f32 1.442695, %v4032_v9  ;;  %v5499_v9 = vld [vmem:[#allocation13 + $0xb8] sm:$0xff]  }
0x1603   :  { %5580 = vpow2.f32 %v4035_v21  ;;  %v5500_v21 = vld [vmem:[#allocation13 + $0xf0] sm:$0xff]  }
0x160c   :  { %v5579_v52 = vpop.eup %5578 }
0x160d   :  { %v4037_v51 = vsel %vm600_vm2, %v5579_v52, 0.0 }
0x160e   :  { %4038 = vadd.xlane.f32.xlu1 %v4037_v51  ;;  %v5502_v51 = vld [vmem:[#allocation13 + $0xe8] sm:$0xff]  }
0x1610   :  { %v5581_v54 = vpop.eup %5580 }
0x1611   :  { %v4040_v55 = vsel %vm600_vm2, %v5581_v54, 0.0 }
0x1612   :  { %4041 = vadd.xlane.f32.xlu1 %v4040_v55  ;;  %v5504_v55 = vld [vmem:[#allocation13 + $0xe0] sm:$0xff]  }
0x1623   :  { %4047 = vrot.lane.b32.xlu1 %v6196_v25, %s5800_s3 }
0x163d   :  { %v3730_v53 = vpop.f32.mrf.mxu1 }
0x163e   :  { %v3810_v56 = vpack.c.bf16 %v3806_v22, %v3730_v53  ;;  %v5505_v53 = vld [vmem:[#allocation13 + $0xa0] sm:$0xff]  }
0x163f   :  { %v5289_v38 = vpop.f32.mrf.mxu1 }
0x1640   :  { %5300 = vmatmul.mubr.msk.bf16.vlgmr.msra.gmra.mxu1 %vm447_vm1, %v3810_v56  ;;  %v5506_v56 = vld [vmem:[#allocation13 + $0xd8] sm:$0xff]  }
0x1641   :  { %5319 = vmatpush3.msra.mxu1 %v4124_v50  ;;  %5320 = vmatprep.mubr.msk.f32.mxu1 %vm5805_vm0, %v5804_v1  ;;  %v5507_v38 = vld [vmem:[#allocation13 + $0x98] sm:$0xff]  }
0x1642   :  { %4429 = vmatprep.subr.bf16.mxu1 %v5476_v28 }
0x1697   :  { %v4039_v24 = vpop.xlane.xlu1 %4038 }
0x1698   :  { %5582 = vrcp.f32 %v4039_v24 }
0x169b   :  { %v4042_v58 = vpop.xlane.xlu1 %4041 }
0x169c   :  { %5584 = vrcp.f32 %v4042_v58 }
0x169f   :  { %v4048_v59 = vpop.permute.xlu1 %4047 }
0x16a0   :  { %5314 = vmatpush3.msra.mxu0 %v4048_v59 }
0x16a1   :  { %5323 = vmatprep.subr.bf16.mxu0 %v5804_v1 }
0x16a5   :  { %v5583_v60 = vpop.eup %5582 }
0x16a6   :  { %v4045_v25 = vmul.f32 %v5583_v60, %v5579_v52  ;;  %v5501_v52 = vld [vmem:[#allocation13 + $0xb0] sm:$0xff]  }
0x16a8   :  { %5316 = vmatmul.mubr.msk.f32.vlgmr.msra.gmra.mxu0 %vm600_vm2, %v4045_v25 }
0x16a9   :  { %v5585_v61 = vpop.eup %5584  ;;  %5327 = vmatprep.mubr.msk.bf16.mxu0 %vm5805_vm0, %v5804_v1  ;;  %5324 = vmatpush3.bf16.msra.mxu0 %v5472_v63 }
0x16aa   :  { %v4046_v62 = vmul.f32 %v5585_v61, %v5581_v54  ;;  %5325 = vmatprep.subr.bf16.mxu0 %v5804_v1  ;;  %v5503_v54 = vld [vmem:[#allocation13 + $0xa8] sm:$0xff]  }
0x16ac   :  { %5321 = vmatmul.mubr.msk.f32.vlgmr.msra.gmra.mxu1 %vm600_vm2, %v4046_v62 }
0x16ad   :  { %4461 = vmatprep.mubr.bf16.mxu1 %v5803_v0  ;;  %5326 = vmatpush3.bf16.msra.mxu0 %v5473_v2 }
0x16ae   :  { %5045 = vmatprep.subr.bf16.mxu0 %v5498_v49 }
0x1700   :  { %v3860_v36 = vpop.f32.mrf.mxu1 }
0x1701   :  { %v3867_v5 = vadd.f32 %v3860_v36, %v3474_v30 }
0x1702   :  { %v5301_v7 = vpop.f32.mrf.mxu1 }
0x1704   :  { %v3863_v10 = vpop.f32.mrf.mxu1 }
0x1705   :  { %v3868_v11 = vadd.f32 %v3863_v10, %v3477_v8 }
0x1706   :  { %v5302_v12 = vpop.f32.mrf.mxu1 }
0x1768   :  { %v4119_v13 = vpop.f32.mrf.mxu0 }
0x176a   :  { %v5317_v0 = vpop.f32.mrf.mxu0 }
0x176b   :  { %v4878_v0 = vld [vmem:[%s6405_s5 + $0x1] ss:$0 sm:$0xff] }
0x176c   :  { %v4195_v14 = vpop.f32.mrf.mxu1 }
0x176d   :  { %v4199_v35 = vpack.c.bf16 %v4195_v14, %v4119_v13 }
0x176e   :  { %v5322_v15 = vpop.f32.mrf.mxu1 }
0x176f   :  { %5328 = vmatmul.mubr.msk.bf16.vlgmr.msra.gmra.mxu0 %vm447_vm1, %v4199_v35 }
0x1770   :  { %5046 = vmatpush3.bf16.msra.mxu0 %v5499_v9  ;;  %v4896_v9 = vld [vmem:[#allocation15 + $0x1] ss:$0 sm:$0xff] }
0x1771   :  { %5047 = vmatprep.subr.bf16.mxu0 %v5500_v21 }
0x1774   :  { %5048 = vmatpush3.bf16.msra.mxu0 %v5501_v52 }
0x1775   :  { %5049 = vmatprep.subr.bf16.mxu0 %v5502_v51 }
0x1778   :  { %5050 = vmatpush3.bf16.msra.mxu0 %v5503_v54 }
0x1779   :  { %5051 = vmatprep.subr.bf16.mxu0 %v5504_v55 }
0x177c   :  { %5052 = vmatpush3.bf16.msra.mxu0 %v5505_v53 }
0x177d   :  { %5053 = vmatprep.subr.bf16.mxu0 %v5506_v56 }
0x1780   :  { %5054 = vmatpush3.bf16.msra.mxu0 %v5507_v38 }
0x182f   :  { %v4249_v1 = vpop.f32.mrf.mxu0 }
0x1830   :  { %v4256_v18 = vadd.f32 %v4249_v1, %v3867_v5 }
0x1831   :  { %v5329_v23 = vpop.f32.mrf.mxu0 }
0x1832   :  { %v4266_v3 = vadd.f32 %v4876_v47, %v4256_v18 }
0x1833   :  { %v4252_v19 = vpop.f32.mrf.mxu0 }
0x1834   :  { %v4257_v41 = vadd.f32 %v4252_v19, %v3868_v11  ;;  %v6370_v45 = vadd.f32 %v4266_v3, %v6180_v16  ;;  %v5474_v16 = vld [vmem:[#allocation10 + $0xf0] ss:$8 sps:$4 sm:$0xff]  }
0x1835   :  { %v5330_v57 = vpop.f32.mrf.mxu0  ;;  %4430 = vmatpush1.bf16.msra.mxu1 %v5474_v16 }
0x1836   :  { %v4267_v4 = vadd.f32 %v4876_v47, %v4257_v41  ;;  %4274 = vadd.xlane.f32.xlu0 %v6370_v45  ;;  %v4280_v22 = vmul.f32 %v6370_v45, %v6370_v45  ;;  %4431 = vmatprep.subr.bf16.mxu1 %v5479_v32  ;;  %v4879_v47 = vld [vmem:[#allocation9 + $0x1] ss:$0 sm:$0xff]  ;;  %v5508_v41 = vld [vmem:[#allocation13 + $0xd0] sm:$0xff]  }
0x1837   :  { %v5509_v57 = vld [vmem:[#allocation13 + $0x90] sm:$0xff]   ;;  %5055 = vmatprep.subr.bf16.mxu0 %v5508_v41 }
0x1838   :  { %v6376_v26 = vadd.f32 %v4267_v4, %v6182_v17  ;;  %v5483_v17 = vld [vmem:[#allocation10 + $0xc0] ss:$8 sps:$4 sm:$0xff]   ;;  %5056 = vmatpush3.bf16.msra.mxu0 %v5509_v57  ;;  %v5511_v4 = vld [vmem:[#allocation13 + $0x88] sm:$0xff]  }
0x1839   :  { %4432 = vmatpush1.bf16.msra.mxu1 %v5477_v34 }
0x183a   :  { %4282 = vadd.xlane.f32.xlu0 %v4280_v22  ;;  %4276 = vadd.xlane.f32.xlu1 %v6376_v26  ;;  %v4281_v27 = vmul.f32 %v6376_v26, %v6376_v26  ;;  %v5512_v22 = vld [vmem:[#allocation13 + $0xc0] sm:$0xff]  }
0x183b   :  { %4433 = vmatprep.subr.bf16.mxu1 %v5482_v40 }
0x183d   :  { %4434 = vmatpush1.bf16.msra.mxu1 %v5480_v43 }
0x183e   :  { %4284 = vadd.xlane.f32.xlu0 %v4281_v27  ;;  %4435 = vmatprep.subr.bf16.mxu1 %v5485_v39  ;;  %v5513_v27 = vld [vmem:[#allocation13 + $0x80] sm:$0xff]  }
0x1841   :  { %4436 = vmatpush1.bf16.msra.mxu1 %v5483_v17 }
0x1842   :  { %4437 = vmatprep.subr.bf16.mxu1 %v5488_v42 }
0x1845   :  { %4438 = vmatpush1.bf16.msra.mxu1 %v5486_v44 }
0x1846   :  { %4439 = vmatprep.subr.bf16.mxu1 %v5491_v37 }
0x1849   :  { %4440 = vmatpush1.bf16.msra.mxu1 %v5489_v46 }
0x184a   :  { %4441 = vmatprep.subr.bf16.mxu1 %v5494_v29 }
0x184d   :  { %4442 = vmatpush1.bf16.msra.mxu1 %v5492_v6 }
0x184e   :  { %4443 = vmatprep.subr.bf16.mxu1 %v5497_v20 }
0x1851   :  { %4444 = vmatpush1.bf16.msra.mxu1 %v5495_v48 }
0x18bf   :  { %v4275_v50 = vpop.xlane.xlu0 %4274 }
0x18c0   :  { %v4278_v24 = vmul.f32 0.0078125, %v4275_v50 }
0x18c2   :  { %v4288_v60 = vmul.f32 %v4278_v24, %v4278_v24  ;;  %v4294_v11 = vsub.f32 %v6370_v45, %v4278_v24  ;;  %v5510_v45 = vld [vmem:[#allocation13 + $0xc8] sm:$0xff]  }
0x18c3   :  { %v4283_v58 = vpop.xlane.xlu0 %4282  ;;  %v4277_v59 = vpop.xlane.xlu1 %4276  ;;  %5057 = vmatprep.subr.bf16.mxu0 %v5510_v45 }
0x18c4   :  { %v4286_v25 = vmul.f32 0.0078125, %v4283_v58  ;;  %v4279_v61 = vmul.f32 0.0078125, %v4277_v59  ;;  %5058 = vmatpush3.bf16.msra.mxu0 %v5511_v4 }
0x18c5   :  { %5059 = vmatprep.subr.bf16.mxu0 %v5512_v22 }
0x18c6   :  { %v4290_v62 = vsub.f32 %v4286_v25, %v4288_v60  ;;  %v4289_v30 = vmul.f32 %v4279_v61, %v4279_v61  ;;  %v4295_v14 = vsub.f32 %v6376_v26, %v4279_v61  ;;  %v4337_v26 = vld [vmem:[#allocation12 + $0x2] sm:$0x3] }
0x18c7   :  { %v4285_v63 = vpop.xlane.xlu0 %4284  ;;  %v4346_v16 = vrot.slane %v4337_v26, %v5945_v31  ;;  %v4342_v32 = vrot.slane %v4337_v26, %v5951_v33 }
0x18c8   :  { %v4292_v2 = vmax.f32 %v4290_v62, 0.0  ;;  %v4287_v36 = vmul.f32 0.0078125, %v4285_v63  ;;  %5060 = vmatpush3.bf16.msra.mxu0 %v5513_v27 }
0x18ca   :  { %v4296_v5 = vadd.f32 1e-05, %v4292_v2  ;;  %v4291_v7 = vsub.f32 %v4287_v36, %v4289_v30 }
0x18cc   :  { %5586 = vrsqrt.f32 %v4296_v5  ;;  %v4293_v8 = vmax.f32 %v4291_v7, 0.0 }
0x18ce   :  { %v4297_v10 = vadd.f32 1e-05, %v4293_v8 }
0x18d0   :  { %5588 = vrsqrt.f32 %v4297_v10 }
0x18d9   :  { %v5587_v12 = vpop.eup %5586 }
0x18da   :  { %v4300_v13 = vmul.f32 %v5587_v12, %v4294_v11 }
0x18dc   :  { %v4308_v1 = vmul.f32 %v4878_v0, %v4300_v13 }
0x18dd   :  { %v5589_v35 = vpop.eup %5588 }
0x18de   :  { %v4301_v15 = vmul.f32 %v5589_v35, %v4295_v14  ;;  %v4316_v23 = vadd.f32 %v4879_v47, %v4308_v1  ;;  %v4916_v1 = vld [vmem:[%s6412_s12 + $0x1] ss:$0 sm:$0xff] }
0x18e0   :  { %v4309_v18 = vmul.f32 %v4878_v0, %v4301_v15  ;;  %v4915_v0 = vld [vmem:[%s6411_s11 + $0x1] ss:$0 sm:$0xff] }
0x18e2   :  { %v4317_v3 = vadd.f32 %v4879_v47, %v4309_v18 }
0x18e4   :  { %v4318_v19 = vpack.c.bf16 %v4317_v3, %v4316_v23 }
0x18e6   :  { %4462 = vmatmul.mubr.bf16.vlgmr.msra.gmra.mxu1 %v4318_v19 }
0x19a6   :  { %v4463_v28 = vpop.f32.mrf.mxu1 }
0x19a7   :  { %v4464_v39 = vadd.f32 %v4463_v28, %v4342_v32 }
0x19a8   :  { %v4465_v34 = vpop.f32.mrf.mxu1 }
0x19a9   :  { %v4466_v43 = vadd.f32 %v4465_v34, %v4346_v16  ;;  %v4472_v6 = vmax.f32 %v4464_v39, 0.0 }
0x19aa   :  { %v4467_v40 = vpop.f32.mrf.mxu1 }
0x19ab   :  { %v4468_v17 = vadd.f32 %v4467_v40, %v4342_v32  ;;  %v4473_v46 = vmax.f32 %v4466_v43, 0.0 }
0x19ac   :  { %v4469_v42 = vpop.f32.mrf.mxu1 }
0x19ad   :  { %v4470_v44 = vadd.f32 %v4469_v42, %v4346_v16  ;;  %v4474_v37 = vmax.f32 %v4468_v17, 0.0 }
0x19af   :  { %v4475_v29 = vmax.f32 %v4470_v44, 0.0  ;;  %v4476_v48 = vpack.c.bf16 %v4474_v37, %v4472_v6 }
0x19b1   :  { %v4477_v20 = vpack.c.bf16 %v4475_v29, %v4473_v46 }
0x19b3   :  { %4647 = vmatprep.mubr.bf16.mxu0 %v4477_v20 }
0x19b4   :  { %4648 = vmatmul.mubr.bf16.vlgmr.msra.gmra.mxu0 %v4476_v48 }
0x1a74   :  { %v5061_v49 = vpop.f32.mrf.mxu0 }
0x1a76   :  { %v5062_v31 = vpop.f32.mrf.mxu0 }
0x1a77   :  { %v5063_v21 = vadd.f32 %v5062_v31, %v5061_v49 }
0x1a78   :  { %v5064_v33 = vpop.f32.mrf.mxu0 }
0x1a79   :  { %v4650_v52 = vadd.f32 %v5063_v21, %v4896_v9 }
0x1a7a   :  { %v5065_v51 = vpop.f32.mrf.mxu0 }
0x1a7b   :  { %v5066_v54 = vadd.f32 %v5065_v51, %v5064_v33  ;;  %v4656_v55 = vadd.f32 %v4650_v52, %v4316_v23 }
0x1a7d   :  { %v4653_v53 = vadd.f32 %v5066_v54, %v4896_v9  ;;  %4662 = vadd.xlane.f32.xlu0 %v4656_v55  ;;  %v4668_v50 = vmul.f32 %v4656_v55, %v4656_v55 }
0x1a7f   :  { %v4657_v56 = vadd.f32 %v4653_v53, %v4317_v3 }
0x1a81   :  { %4664 = vadd.xlane.f32.xlu0 %v4657_v56  ;;  %v4669_v38 = vmul.f32 %v4657_v56, %v4657_v56 }
0x1a83   :  { %4672 = vadd.xlane.f32.xlu1 %v4669_v38 }
0x1a85   :  { %4670 = vadd.xlane.f32.xlu0 %v4668_v50 }
0x1b06   :  { %v4663_v24 = vpop.xlane.xlu0 %4662 }
0x1b07   :  { %v4666_v59 = vmul.f32 0.0078125, %v4663_v24 }
0x1b09   :  { %v4676_v2 = vmul.f32 %v4666_v59, %v4666_v59  ;;  %v4682_v14 = vsub.f32 %v4656_v55, %v4666_v59 }
0x1b0a   :  { %v4665_v58 = vpop.xlane.xlu0 %4664 }
0x1b0b   :  { %v4667_v60 = vmul.f32 0.0078125, %v4665_v58 }
0x1b0c   :  { %v4673_v25 = vpop.xlane.xlu1 %4672 }
0x1b0d   :  { %v4677_v61 = vmul.f32 %v4667_v60, %v4667_v60  ;;  %v4675_v62 = vmul.f32 0.0078125, %v4673_v25  ;;  %v4683_v12 = vsub.f32 %v4657_v56, %v4667_v60 }
0x1b0e   :  { %v4671_v63 = vpop.xlane.xlu0 %4670 }
0x1b0f   :  { %v4679_v30 = vsub.f32 %v4675_v62, %v4677_v61  ;;  %v4674_v36 = vmul.f32 0.0078125, %v4671_v63 }
0x1b11   :  { %v4681_v5 = vmax.f32 %v4679_v30, 0.0  ;;  %v4678_v7 = vsub.f32 %v4674_v36, %v4676_v2 }
0x1b13   :  { %v4685_v8 = vadd.f32 1e-05, %v4681_v5  ;;  %v4680_v10 = vmax.f32 %v4678_v7, 0.0 }
0x1b15   :  { %5590 = vrsqrt.f32 %v4685_v8  ;;  %v4684_v11 = vadd.f32 1e-05, %v4680_v10 }
0x1b17   :  { %5592 = vrsqrt.f32 %v4684_v11 }
0x1b22   :  { %v5591_v13 = vpop.eup %5590 }
0x1b23   :  { %v4689_v35 = vmul.f32 %v5591_v13, %v4683_v12 }
0x1b24   :  { %v5593_v15 = vpop.eup %5592 }
0x1b25   :  { %v4697_v47 = vmul.f32 %v4915_v0, %v4689_v35  ;;  %v4688_v18 = vmul.f32 %v5593_v15, %v4682_v14 }
0x1b27   :  { %v4705_v23 = vadd.f32 %v4916_v1, %v4697_v47  ;;  %v4696_v3 = vmul.f32 %v4915_v0, %v4688_v18 }
0x1b29   :  { %4707 = vst [vmem:[%s6413_s13 + $0x8] sm:$0xff] %v4705_v23  ;;  %v4704_v19 = vadd.f32 %v4916_v1, %v4696_v3 }
0x1b2b   :  { %4706 = vst [vmem:[%s6413_s13] sm:$0xff] %v4704_v19 }
0x1b2c   :  { %4712 = vsyncpa [#allocation3], 1 }
0x1b2d   :  { %4713 = vsyncpa [#allocation5], 1 }
0x1b2e   :  { %4714 = vsyncpa [#allocation8], 1 }
0x1b2f   :  { %4715 = vsyncpa [#allocation11], 1 }
0x1b30   :  { %4716 = vsyncpa [#allocation14], 1 }

</bundles_post_ra>
